<compile_context>
chip_gen: v7x
topology: tpu7x:2x2x1
jax: 0.10.0
libtpu: 0.0.40
codegen_flags: <defaults>
</compile_context>

<pallas_src>
import jax
import jax.numpy as jnp
import numpy as np
from jax.experimental import pallas as pl
from jax.experimental.pallas import tpu as pltpu


# ----------------------------- Pallas kernel --------------------------------
def _lfmmi_fwd_kernel(nch_ref,    # SMEM (nbt,) int32: #active T-chunks per batch tile
                      x_ref,      # (1, bt, Tt, P)   features
                      cmapT_ref,  # (1, bt, P, 2S)   state->pdf map, [num | den]
                      expE_ref,   # (1, bt, 2S, 2S)  exp(trans), block-diag num/den
                      init_ref,   # (1, bt, 1, 2S)   log initial probs
                      final_ref,  # (1, bt, 1, 2S)   log final probs
                      lens_ref,   # (1, bt, 1, 1)    int32 sequence lengths
                      out_ref,    # (1, bt, 1, 2)    [...,0] = num logp, [...,1] = den
                      llh_ref,    # VMEM scratch (bt, Tt, 2S) f32  emission llh
                      alpha_ref,  # VMEM scratch (bt, 1, 2S) f32   alpha carry
                      sel_ref):   # VMEM scratch (bt, 1, 2S) f32   alpha at t = len-1
    tc = pl.program_id(1)
    n_active = nch_ref[pl.program_id(0)]
    bt, Tt, S2 = llh_ref.shape
    S = S2 // 2

    @pl.when(tc < n_active)
    def _():
        # Emission log-likelihoods for num AND den in ONE batched MXU matmul
        # (num|den fused along the state axis -> 2S output columns).
        llh_ref[...] = jnp.einsum('btp,bpj->btj', x_ref[0], cmapT_ref[0],
                                  preferred_element_type=jnp.float32)

        expE = expE_ref[0]                     # (bt, 2S, 2S)
        init_v = init_ref[0]                   # (bt, 1, 2S)
        lens = lens_ref[0]                     # (bt, 1, 1)
        is_num = jax.lax.broadcasted_iota(jnp.int32, (bt, 1, S2), 2) < S
        t0 = tc * Tt

        # Scaled forward recursion (exp space), vectorized over the bt sequences.
        #   alpha_new[j] = m + log(sum_i exp(alpha[i] - m) * exp(trans)[i, j]) + llh[t, j]
        # The shift m is taken per sequence and per (num/den) block, which is
        # exact because the combined transition matrix is block-diagonal.
        def step(t_local, carry):
            alpha, sel = carry                                # (bt, 1, 2S) each
            llh_t = llh_ref[:, pl.ds(t_local, 1), :]          # (bt, 1, 2S)
            m_n = jnp.max(alpha[:, :, :S], axis=-1, keepdims=True)
            m_d = jnp.max(alpha[:, :, S:], axis=-1, keepdims=True)
            m = jnp.where(is_num, m_n, m_d)                   # (bt, 1, 2S)
            p = jnp.exp(alpha - m)                            # 2S exps / sequence
            s = jnp.einsum('bki,bij->bkj', p, expE,           # batched matvec (MXU)
                           preferred_element_type=jnp.float32)
            alpha_new = m + jnp.log(s) + llh_t
            t_glob = t0 + t_local
            # first frame: alpha = init + llh[0]
            alpha_new = jnp.where(t_glob == 0, init_v + llh_t, alpha_new)
            # capture alpha of the last valid frame (hoists the end logsumexp)
            sel = jnp.where(t_glob == lens - 1, alpha_new, sel)
            return alpha_new, sel

        unroll = True if Tt <= 32 else 8
        alpha_f, sel_f = jax.lax.fori_loop(
            0, Tt, step, (alpha_ref[...], sel_ref[...]), unroll=unroll)
        alpha_ref[...] = alpha_f
        sel_ref[...] = sel_f

        # Final score, once per sequence, at the last active chunk.
        @pl.when(tc == n_active - 1)
        def _():
            v = sel_f + final_ref[0]                          # (bt, 1, 2S)

            def lse(z):                                       # logsumexp over lanes
                mz = jnp.max(z, axis=-1, keepdims=True)
                return mz + jnp.log(jnp.sum(jnp.exp(z - mz), axis=-1,
                                            keepdims=True))

            lp_num = lse(v[:, :, :S])                         # (bt, 1, 1)
            lp_den = lse(v[:, :, S:])
            col = jax.lax.broadcasted_iota(jnp.int32, (bt, 1, 2), 2)
            out_ref[...] = jnp.where(col == 0, lp_num, lp_den).reshape(1, bt, 1, 2)


# ------------------------------- wrappers ------------------------------------
def _pad_batch(a, b_pad, value=0):
    pad = b_pad - a.shape[0]
    if pad == 0:
        return a
    widths = [(0, pad)] + [(0, 0)] * (a.ndim - 1)
    return jnp.pad(a, widths, constant_values=value)


def _combine_fsms(numfsms, denfsms):
    """Stack num|den along the state axis: one FSM of 2S states per sequence,
    block-diagonal transitions stored as exp(trans) (exp(-inf)=0, NaN-free)."""
    init_n, trans_n, final_n, cmap_n = numfsms
    init_d, trans_d, final_d, cmap_d = denfsms
    B, S, P = cmap_n.shape
    f32 = jnp.float32
    init_c = jnp.concatenate([init_n.reshape(B, S), init_d.reshape(B, S)],
                             axis=-1).astype(f32)                       # (B, 2S)
    final_c = jnp.concatenate([final_n.reshape(B, S), final_d.reshape(B, S)],
                              axis=-1).astype(f32)                      # (B, 2S)
    zero = jnp.zeros((B, S, S), f32)
    expE = jnp.concatenate([
        jnp.concatenate([jnp.exp(trans_n.astype(f32)), zero], axis=-1),
        jnp.concatenate([zero, jnp.exp(trans_d.astype(f32))], axis=-1)],
        axis=-2)                                                        # (B, 2S, 2S)
    cmapT_c = jnp.concatenate([jnp.swapaxes(cmap_n, -1, -2),
                               jnp.swapaxes(cmap_d, -1, -2)],
                              axis=-1).astype(f32)                      # (B, P, 2S)
    return init_c, final_c, expE, cmapT_c, S


def fsm_log_marginals_fused(x, seqlengths, numfsms, denfsms,
                            batch_tile=4, time_tile=128,
                            emission_dtype=jnp.float32):
    """Per-sequence log p(x_b | FSM_b) for numerator AND denominator (one kernel).

    batch_tile: choose so that ceil(B / batch_tile) >= #TensorCores (v7x).
    time_tile : T-chunk length (multiple of 8); sized against the VMEM budget.
    emission_dtype: jnp.bfloat16 recommended on v6e/v7x for the emission matmul.
    """
    B, T, P = x.shape
    init_c, final_c, expE, cmapT_c, S = _combine_fsms(numfsms, denfsms)
    S2 = 2 * S

    bt = min(batch_tile, B)
    nbt = pl.cdiv(B, bt)
    b_pad = nbt * bt

    Tt = T if T <= time_tile else time_tile      # time_tile must be a multiple of 8
    ntc = pl.cdiv(T, Tt)
    t_pad = ntc * Tt

    # batch / time padding (padded rows & frames are computed but discarded)
    xp = _pad_batch(x.astype(emission_dtype), b_pad)
    if t_pad != T:
        xp = jnp.pad(xp, ((0, 0), (0, t_pad - T), (0, 0)))
    lens = _pad_batch(seqlengths.astype(jnp.int32), b_pad, value=1)

    init_p = _pad_batch(init_c, b_pad)
    final_p = _pad_batch(final_c, b_pad)
    expE_p = _pad_batch(expE, b_pad, value=1.0)          # keep padded rows finite
    cmapT_p = _pad_batch(cmapT_c.astype(emission_dtype), b_pad)

    # tile layout (nbt leading)
    x_t = xp.reshape(nbt, bt, t_pad, P)
    cmapT_t = cmapT_p.reshape(nbt, bt, P, S2)
    expE_t = expE_p.reshape(nbt, bt, S2, S2)
    init_t = init_p.reshape(nbt, bt, 1, S2)
    final_t = final_p.reshape(nbt, bt, 1, S2)
    lens_t = lens.reshape(nbt, bt, 1, 1)

    # per-tile number of active T-chunks (scalar-prefetched; skips padded chunks)
    max_len = lens.reshape(nbt, bt).max(axis=1)
    nchunks = jnp.maximum((max_len + Tt - 1) // Tt, 1).astype(jnp.int32)

    grid_spec = pltpu.PrefetchScalarGridSpec(
        num_scalar_prefetch=1,
        grid=(nbt, ntc),
        in_specs=[
            # x: repeats the last needed chunk index past max_len -> no extra DMA
            pl.BlockSpec((1, bt, Tt, P),
                         lambda i, tc, nch: (i, 0, jnp.minimum(tc, nch[i] - 1), 0)),
            pl.BlockSpec((1, bt, P, S2), lambda i, tc, nch: (i, 0, 0, 0)),
            pl.BlockSpec((1, bt, S2, S2), lambda i, tc, nch: (i, 0, 0, 0)),
            pl.BlockSpec((1, bt, 1, S2), lambda i, tc, nch: (i, 0, 0, 0)),
            pl.BlockSpec((1, bt, 1, S2), lambda i, tc, nch: (i, 0, 0, 0)),
            pl.BlockSpec((1, bt, 1, 1), lambda i, tc, nch: (i, 0, 0, 0)),
        ],
        out_specs=pl.BlockSpec((1, bt, 1, 2), lambda i, tc, nch: (i, 0, 0, 0)),
        scratch_shapes=[
            pltpu.VMEM((bt, Tt, S2), jnp.float32),   # emission llh for the chunk
            pltpu.VMEM((bt, 1, S2), jnp.float32),    # alpha carry across chunks
            pltpu.VMEM((bt, 1, S2), jnp.float32),    # alpha at t = len-1
        ],
    )

    out = pl.pallas_call(
        _lfmmi_fwd_kernel,
        out_shape=jax.ShapeDtypeStruct((nbt, bt, 1, 2), jnp.float32),
        grid_spec=grid_spec,
        compiler_params=pltpu.CompilerParams(
            dimension_semantics=("parallel", "arbitrary"),
            vmem_limit_bytes=48 * 1024 * 1024),
    )(nchunks, x_t, cmapT_t, expE_t, init_t, final_t, lens_t)

    num_lp = out[:, :, 0, 0].reshape(b_pad)[:B]
    den_lp = out[:, :, 0, 1].reshape(b_pad)[:B]
    return num_lp, den_lp


def lfmmi_loss(x, seqlengths, numfsms, denfsms, den_scale=1.0,
               batch_tile=4, time_tile=128, emission_dtype=jnp.float32):
    num_lp, den_lp = fsm_log_marginals_fused(
        x, seqlengths, numfsms, denfsms,
        batch_tile=batch_tile, time_tile=time_tile, emission_dtype=emission_dtype)
    return -(jnp.sum(num_lp) - den_scale * jnp.sum(den_lp))


# -------------------- deterministic synthetic FSMs ---------------------------
def make_fsms(key, B, S, P):
    k1, k2, k3, k4 = jax.random.split(key, 4)
    init = jax.nn.log_softmax(jax.random.normal(k1, (B, 1, S)), axis=-1)
    trans = jax.nn.log_softmax(jax.random.normal(k2, (B, S, S)), axis=-1)
    final = jax.nn.log_softmax(jax.random.normal(k3, (B, 1, S)), axis=-1)
    pdf_ids = jax.random.randint(k4, (B, S), 0, P)
    cmap = jax.nn.one_hot(pdf_ids, P, dtype=jnp.float32)
    return (init.astype(jnp.float32), trans.astype(jnp.float32),
            final.astype(jnp.float32), cmap)


# -------------------- pure-JAX reference (for verification) ------------------
def ref_log_marginal(x, seqlengths, init, trans, final, cmap):
    B, T, P = x.shape
    out = []
    for b in range(B):
        llh = x[b] @ cmap[b].T                       # (T, S)
        alpha = init[b, 0] + llh[0]
        L = int(seqlengths[b])
        rec = jax.nn.logsumexp(alpha + final[b, 0]) if L == 1 else None
        for t in range(1, T):
            alpha = jax.nn.logsumexp(alpha[:, None] + trans[b], axis=0) + llh[t]
            if t == L - 1:
                rec = jax.nn.logsumexp(alpha + final[b, 0])
        out.append(rec)
    return jnp.stack(out)


if __name__ == "__main__":
    B, T, P, S = 2, 8, 32, 16
    den_scale = 1.0

    key = jax.random.PRNGKey(0)
    kx, knum, kden = jax.random.split(key, 3)

    x = jax.random.normal(kx, (B, T, P), dtype=jnp.float32)
    seqlengths = jnp.array([T, 5], dtype=jnp.int32)

    numfsms = make_fsms(knum, B, S, P)
    denfsms = make_fsms(kden, B, S, P)

    num_lp, den_lp = fsm_log_marginals_fused(x, seqlengths, numfsms, denfsms)
    loss = lfmmi_loss(x, seqlengths, numfsms, denfsms, den_scale=den_scale)
    loss, num_lp, den_lp = jax.block_until_ready((loss, num_lp, den_lp))

    # Verify against pure-JAX reference.
    num_ref = ref_log_marginal(x, seqlengths, *numfsms)
    den_ref = ref_log_marginal(x, seqlengths, *denfsms)
    loss_ref = -(jnp.sum(num_ref) - den_scale * jnp.sum(den_ref))

    assert np.allclose(np.asarray(num_lp), np.asarray(num_ref),
                       rtol=1e-3, atol=1e-3), (num_lp, num_ref)
    assert np.allclose(np.asarray(den_lp), np.asarray(den_ref),
                       rtol=1e-3, atol=1e-3), (den_lp, den_ref)
    assert np.allclose(np.asarray(loss), np.asarray(loss_ref),
                       rtol=1e-3, atol=1e-3), (loss, loss_ref)

    print("KERNEL_OK")
</pallas_src>

<mosaic_0001>
module attributes {stable_mosaic.version = 11 : i64} {
  func.func @_lfmmi_fwd_kernel(%arg0: i32, %arg1: i32, %arg2: memref<1xi32, #tpu.memory_space<smem>>, %arg3: memref<1x2x8x32xf32, #tpu.memory_space<vmem>>, %arg4: memref<1x2x32x32xf32, #tpu.memory_space<vmem>>, %arg5: memref<1x2x32x32xf32, #tpu.memory_space<vmem>>, %arg6: memref<1x2x1x32xf32, #tpu.memory_space<vmem>>, %arg7: memref<1x2x1x32xf32, #tpu.memory_space<vmem>>, %arg8: memref<1x2x1x1xi32, #tpu.memory_space<vmem>>, %arg9: memref<1x2x1x2xf32, #tpu.memory_space<vmem>>, %arg10: memref<2x8x32xf32, #tpu.memory_space<vmem>>, %arg11: memref<2x1x32xf32, #tpu.memory_space<vmem>>, %arg12: memref<2x1x32xf32, #tpu.memory_space<vmem>>) attributes {dimension_semantics = [#tpu.dimension_semantics<parallel>, #tpu.dimension_semantics<arbitrary>], iteration_bounds = array<i64: 1, 1>, scalar_prefetch = 1 : i64, scratch_operands = 3 : i64, tpu.core_type = #tpu.core_type<tc>, window_params = [{transform_indices = @transform_0, window_bounds = array<i64: 1, 2, 8, 32>}, {transform_indices = @transform_1, window_bounds = array<i64: 1, 2, 32, 32>}, {transform_indices = @transform_2, window_bounds = array<i64: 1, 2, 32, 32>}, {transform_indices = @transform_3, window_bounds = array<i64: 1, 2, 1, 32>}, {transform_indices = @transform_4, window_bounds = array<i64: 1, 2, 1, 32>}, {transform_indices = @transform_5, window_bounds = array<i64: 1, 2, 1, 1>}, {transform_indices = @transform_6, window_bounds = array<i64: 1, 2, 1, 2>}]} {
    %0 = arith.index_cast %arg0 : i32 to index
    %1 = memref.load %arg2[%0] : memref<1xi32, #tpu.memory_space<smem>>
    %2 = arith.cmpi slt, %arg1, %1 : i32
    %3 = arith.extui %2 : i1 to i32
    %c0_i32 = arith.constant 0 : i32
    %4 = arith.cmpi ne, %3, %c0_i32 : i32
    scf.if %4 {
      %c0 = arith.constant 0 : index
      %c0_0 = arith.constant 0 : index
      %c0_1 = arith.constant 0 : index
      %c0_2 = arith.constant 0 : index
      %5 = vector.load %arg3[%c0, %c0_0, %c0_1, %c0_2] : memref<1x2x8x32xf32, #tpu.memory_space<vmem>>, vector<1x2x8x32xf32>
      %6 = vector.shape_cast %5 : vector<1x2x8x32xf32> to vector<2x8x32xf32>
      %c0_3 = arith.constant 0 : index
      %c0_4 = arith.constant 0 : index
      %c0_5 = arith.constant 0 : index
      %c0_6 = arith.constant 0 : index
      %7 = vector.load %arg4[%c0_3, %c0_4, %c0_5, %c0_6] : memref<1x2x32x32xf32, #tpu.memory_space<vmem>>, vector<1x2x32x32xf32>
      %8 = vector.shape_cast %7 : vector<1x2x32x32xf32> to vector<2x32x32xf32>
      "tpu.trace_start"() <{level = 10 : i32, message = "btp,bpj->btj"}> : () -> ()
      %cst = arith.constant dense<0.000000e+00> : vector<2x8x32xf32>
      %9 = tpu.matmul %6, %8, %cst {dimension_numbers = #tpu.dot_dimension_numbers<[2], [1], [1], [2], [0, 0, 0, 1, 1, 2], [0], [0]>} : vector<2x8x32xf32>, vector<2x32x32xf32>, vector<2x8x32xf32> -> vector<2x8x32xf32>
      "tpu.trace_stop"() : () -> ()
      %c0_7 = arith.constant 0 : index
      %c0_8 = arith.constant 0 : index
      %c0_9 = arith.constant 0 : index
      %10 = vector.load %arg10[%c0_7, %c0_8, %c0_9] : memref<2x8x32xf32, #tpu.memory_space<vmem>>, vector<2x8x32xf32>
      tpu.vector_store %arg10[%c0_7, %c0_8, %c0_9], %9 {strides = array<i32>} : memref<2x8x32xf32, #tpu.memory_space<vmem>>, vector<2x8x32xf32>,
      %c0_10 = arith.constant 0 : index
      %c0_11 = arith.constant 0 : index
      %c0_12 = arith.constant 0 : index
      %c0_13 = arith.constant 0 : index
      %11 = vector.load %arg5[%c0_10, %c0_11, %c0_12, %c0_13] : memref<1x2x32x32xf32, #tpu.memory_space<vmem>>, vector<1x2x32x32xf32>
      %12 = vector.shape_cast %11 : vector<1x2x32x32xf32> to vector<2x32x32xf32>
      %c0_14 = arith.constant 0 : index
      %c0_15 = arith.constant 0 : index
      %c0_16 = arith.constant 0 : index
      %c0_17 = arith.constant 0 : index
      %13 = vector.load %arg6[%c0_14, %c0_15, %c0_16, %c0_17] : memref<1x2x1x32xf32, #tpu.memory_space<vmem>>, vector<1x2x1x32xf32>
      %14 = vector.shape_cast %13 : vector<1x2x1x32xf32> to vector<2x1x32xf32>
      %c0_18 = arith.constant 0 : index
      %c0_19 = arith.constant 0 : index
      %c0_20 = arith.constant 0 : index
      %c0_21 = arith.constant 0 : index
      %15 = vector.load %arg8[%c0_18, %c0_19, %c0_20, %c0_21] : memref<1x2x1x1xi32, #tpu.memory_space<vmem>>, vector<1x2x1x1xi32>
      %16 = vector.shape_cast %15 : vector<1x2x1x1xi32> to vector<2x1x1xi32>
      %17 = tpu.iota {dimensions = array<i32: 2>} : vector<2x1x32xi32>
      %c16_i32 = arith.constant 16 : i32
      %18 = vector.broadcast %c16_i32 : i32 to vector<2x1x32xi32>
      %19 = arith.cmpi slt, %17, %18 : vector<2x1x32xi32>
      %c8_i32 = arith.constant 8 : i32
      %20 = arith.muli %arg1, %c8_i32 : i32
      %c0_22 = arith.constant 0 : index
      %c0_23 = arith.constant 0 : index
      %c0_24 = arith.constant 0 : index
      %21 = vector.load %arg11[%c0_22, %c0_23, %c0_24] : memref<2x1x32xf32, #tpu.memory_space<vmem>>, vector<2x1x32xf32>
      %c0_25 = arith.constant 0 : index
      %c0_26 = arith.constant 0 : index
      %c0_27 = arith.constant 0 : index
      %22 = vector.load %arg12[%c0_25, %c0_26, %c0_27] : memref<2x1x32xf32, #tpu.memory_space<vmem>>, vector<2x1x32xf32>
      %c0_i32_28 = arith.constant 0 : i32
      %c0_29 = arith.constant 0 : index
      %23 = arith.index_cast %c0_i32_28 : i32 to index
      %c0_30 = arith.constant 0 : index
      %24 = vector.load %arg10[%c0_29, %23, %c0_30] : memref<2x8x32xf32, #tpu.memory_space<vmem>>, vector<2x1x32xf32>
      %25 = vector.extract_strided_slice %21 {offsets = [0, 0, 0], sizes = [2, 1, 16], strides = [1, 1, 1]} : vector<2x1x32xf32> to vector<2x1x16xf32>
      %cst_31 = arith.constant dense<0xFF800000> : vector<2x1xf32>
      %26 = vector.multi_reduction <maximumf>, %25, %cst_31 [2] : vector<2x1x16xf32> to vector<2x1xf32>
      %27 = vector.shape_cast %26 : vector<2x1xf32> to vector<2x1x1xf32>
      %28 = vector.extract_strided_slice %21 {offsets = [0, 0, 16], sizes = [2, 1, 16], strides = [1, 1, 1]} : vector<2x1x32xf32> to vector<2x1x16xf32>
      %cst_32 = arith.constant dense<0xFF800000> : vector<2x1xf32>
      %29 = vector.multi_reduction <maximumf>, %28, %cst_32 [2] : vector<2x1x16xf32> to vector<2x1xf32>
      %30 = vector.shape_cast %29 : vector<2x1xf32> to vector<2x1x1xf32>
      %31 = vector.shape_cast %27 : vector<2x1x1xf32> to vector<2x1x1xf32>
      %32 = vector.broadcast %31 : vector<2x1x1xf32> to vector<2x1x32xf32>
      %33 = vector.shape_cast %30 : vector<2x1x1xf32> to vector<2x1x1xf32>
      %34 = vector.broadcast %33 : vector<2x1x1xf32> to vector<2x1x32xf32>
      %35 = arith.select %19, %32, %34 : vector<2x1x32xi1>, vector<2x1x32xf32>
      %36 = arith.subf %21, %35 : vector<2x1x32xf32>
      %37 = math.exp %36 : vector<2x1x32xf32>
      "tpu.trace_start"() <{level = 10 : i32, message = "bki,bij->bkj"}> : () -> ()
      %cst_33 = arith.constant dense<0.000000e+00> : vector<2x1x32xf32>
      %38 = tpu.matmul %37, %12, %cst_33 {dimension_numbers = #tpu.dot_dimension_numbers<[2], [1], [1], [2], [0, 0, 0, 1, 1, 2], [0], [0]>} : vector<2x1x32xf32>, vector<2x32x32xf32>, vector<2x1x32xf32> -> vector<2x1x32xf32>
      "tpu.trace_stop"() : () -> ()
      %39 = math.log %38 : vector<2x1x32xf32>
      %40 = arith.addf %35, %39 : vector<2x1x32xf32>
      %41 = arith.addf %40, %24 : vector<2x1x32xf32>
      %42 = arith.addi %20, %c0_i32_28 : i32
      %c0_i32_34 = arith.constant 0 : i32
      %43 = arith.cmpi eq, %42, %c0_i32_34 : i32
      %44 = arith.addf %14, %24 : vector<2x1x32xf32>
      %45 = arith.select %43, %44, %41 : vector<2x1x32xf32>
      %c1_i32 = arith.constant 1 : i32
      %46 = vector.broadcast %c1_i32 : i32 to vector<2x1x1xi32>
      %47 = arith.subi %16, %46 : vector<2x1x1xi32>
      %48 = vector.broadcast %42 : i32 to vector<2x1x1xi32>
      %49 = arith.cmpi eq, %48, %47 : vector<2x1x1xi32>
      %50 = vector.shape_cast %49 : vector<2x1x1xi1> to vector<2x1x1xi1>
      %51 = vector.broadcast %50 : vector<2x1x1xi1> to vector<2x1x32xi1>
      %52 = arith.select %51, %45, %22 : vector<2x1x32xi1>, vector<2x1x32xf32>
      %c1_i32_35 = arith.constant 1 : i32
      %c0_36 = arith.constant 0 : index
      %53 = arith.index_cast %c1_i32_35 : i32 to index
      %c0_37 = arith.constant 0 : index
      %54 = vector.load %arg10[%c0_36, %53, %c0_37] : memref<2x8x32xf32, #tpu.memory_space<vmem>>, vector<2x1x32xf32>
      %55 = vector.extract_strided_slice %45 {offsets = [0, 0, 0], sizes = [2, 1, 16], strides = [1, 1, 1]} : vector<2x1x32xf32> to vector<2x1x16xf32>
      %cst_38 = arith.constant dense<0xFF800000> : vector<2x1xf32>
      %56 = vector.multi_reduction <maximumf>, %55, %cst_38 [2] : vector<2x1x16xf32> to vector<2x1xf32>
      %57 = vector.shape_cast %56 : vector<2x1xf32> to vector<2x1x1xf32>
      %58 = vector.extract_strided_slice %45 {offsets = [0, 0, 16], sizes = [2, 1, 16], strides = [1, 1, 1]} : vector<2x1x32xf32> to vector<2x1x16xf32>
      %cst_39 = arith.constant dense<0xFF800000> : vector<2x1xf32>
      %59 = vector.multi_reduction <maximumf>, %58, %cst_39 [2] : vector<2x1x16xf32> to vector<2x1xf32>
      %60 = vector.shape_cast %59 : vector<2x1xf32> to vector<2x1x1xf32>
      %61 = vector.shape_cast %57 : vector<2x1x1xf32> to vector<2x1x1xf32>
      %62 = vector.broadcast %61 : vector<2x1x1xf32> to vector<2x1x32xf32>
      %63 = vector.shape_cast %60 : vector<2x1x1xf32> to vector<2x1x1xf32>
      %64 = vector.broadcast %63 : vector<2x1x1xf32> to vector<2x1x32xf32>
      %65 = arith.select %19, %62, %64 : vector<2x1x32xi1>, vector<2x1x32xf32>
      %66 = arith.subf %45, %65 : vector<2x1x32xf32>
      %67 = math.exp %66 : vector<2x1x32xf32>
      "tpu.trace_start"() <{level = 10 : i32, message = "bki,bij->bkj"}> : () -> ()
      %cst_40 = arith.constant dense<0.000000e+00> : vector<2x1x32xf32>
      %68 = tpu.matmul %67, %12, %cst_40 {dimension_numbers = #tpu.dot_dimension_numbers<[2], [1], [1], [2], [0, 0, 0, 1, 1, 2], [0], [0]>} : vector<2x1x32xf32>, vector<2x32x32xf32>, vector<2x1x32xf32> -> vector<2x1x32xf32>
      "tpu.trace_stop"() : () -> ()
      %69 = math.log %68 : vector<2x1x32xf32>
      %70 = arith.addf %65, %69 : vector<2x1x32xf32>
      %71 = arith.addf %70, %54 : vector<2x1x32xf32>
      %72 = arith.addi %20, %c1_i32_35 : i32
      %c0_i32_41 = arith.constant 0 : i32
      %73 = arith.cmpi eq, %72, %c0_i32_41 : i32
      %74 = arith.addf %14, %54 : vector<2x1x32xf32>
      %75 = arith.select %73, %74, %71 : vector<2x1x32xf32>
      %c1_i32_42 = arith.constant 1 : i32
      %76 = vector.broadcast %c1_i32_42 : i32 to vector<2x1x1xi32>
      %77 = arith.subi %16, %76 : vector<2x1x1xi32>
      %78 = vector.broadcast %72 : i32 to vector<2x1x1xi32>
      %79 = arith.cmpi eq, %78, %77 : vector<2x1x1xi32>
      %80 = vector.shape_cast %79 : vector<2x1x1xi1> to vector<2x1x1xi1>
      %81 = vector.broadcast %80 : vector<2x1x1xi1> to vector<2x1x32xi1>
      %82 = arith.select %81, %75, %52 : vector<2x1x32xi1>, vector<2x1x32xf32>
      %c2_i32 = arith.constant 2 : i32
      %c0_43 = arith.constant 0 : index
      %83 = arith.index_cast %c2_i32 : i32 to index
      %c0_44 = arith.constant 0 : index
      %84 = vector.load %arg10[%c0_43, %83, %c0_44] : memref<2x8x32xf32, #tpu.memory_space<vmem>>, vector<2x1x32xf32>
      %85 = vector.extract_strided_slice %75 {offsets = [0, 0, 0], sizes = [2, 1, 16], strides = [1, 1, 1]} : vector<2x1x32xf32> to vector<2x1x16xf32>
      %cst_45 = arith.constant dense<0xFF800000> : vector<2x1xf32>
      %86 = vector.multi_reduction <maximumf>, %85, %cst_45 [2] : vector<2x1x16xf32> to vector<2x1xf32>
      %87 = vector.shape_cast %86 : vector<2x1xf32> to vector<2x1x1xf32>
      %88 = vector.extract_strided_slice %75 {offsets = [0, 0, 16], sizes = [2, 1, 16], strides = [1, 1, 1]} : vector<2x1x32xf32> to vector<2x1x16xf32>
      %cst_46 = arith.constant dense<0xFF800000> : vector<2x1xf32>
      %89 = vector.multi_reduction <maximumf>, %88, %cst_46 [2] : vector<2x1x16xf32> to vector<2x1xf32>
      %90 = vector.shape_cast %89 : vector<2x1xf32> to vector<2x1x1xf32>
      %91 = vector.shape_cast %87 : vector<2x1x1xf32> to vector<2x1x1xf32>
      %92 = vector.broadcast %91 : vector<2x1x1xf32> to vector<2x1x32xf32>
      %93 = vector.shape_cast %90 : vector<2x1x1xf32> to vector<2x1x1xf32>
      %94 = vector.broadcast %93 : vector<2x1x1xf32> to vector<2x1x32xf32>
      %95 = arith.select %19, %92, %94 : vector<2x1x32xi1>, vector<2x1x32xf32>
      %96 = arith.subf %75, %95 : vector<2x1x32xf32>
      %97 = math.exp %96 : vector<2x1x32xf32>
      "tpu.trace_start"() <{level = 10 : i32, message = "bki,bij->bkj"}> : () -> ()
      %cst_47 = arith.constant dense<0.000000e+00> : vector<2x1x32xf32>
      %98 = tpu.matmul %97, %12, %cst_47 {dimension_numbers = #tpu.dot_dimension_numbers<[2], [1], [1], [2], [0, 0, 0, 1, 1, 2], [0], [0]>} : vector<2x1x32xf32>, vector<2x32x32xf32>, vector<2x1x32xf32> -> vector<2x1x32xf32>
      "tpu.trace_stop"() : () -> ()
      %99 = math.log %98 : vector<2x1x32xf32>
      %100 = arith.addf %95, %99 : vector<2x1x32xf32>
      %101 = arith.addf %100, %84 : vector<2x1x32xf32>
      %102 = arith.addi %20, %c2_i32 : i32
      %c0_i32_48 = arith.constant 0 : i32
      %103 = arith.cmpi eq, %102, %c0_i32_48 : i32
      %104 = arith.addf %14, %84 : vector<2x1x32xf32>
      %105 = arith.select %103, %104, %101 : vector<2x1x32xf32>
      %c1_i32_49 = arith.constant 1 : i32
      %106 = vector.broadcast %c1_i32_49 : i32 to vector<2x1x1xi32>
      %107 = arith.subi %16, %106 : vector<2x1x1xi32>
      %108 = vector.broadcast %102 : i32 to vector<2x1x1xi32>
      %109 = arith.cmpi eq, %108, %107 : vector<2x1x1xi32>
      %110 = vector.shape_cast %109 : vector<2x1x1xi1> to vector<2x1x1xi1>
      %111 = vector.broadcast %110 : vector<2x1x1xi1> to vector<2x1x32xi1>
      %112 = arith.select %111, %105, %82 : vector<2x1x32xi1>, vector<2x1x32xf32>
      %c3_i32 = arith.constant 3 : i32
      %c0_50 = arith.constant 0 : index
      %113 = arith.index_cast %c3_i32 : i32 to index
      %c0_51 = arith.constant 0 : index
      %114 = vector.load %arg10[%c0_50, %113, %c0_51] : memref<2x8x32xf32, #tpu.memory_space<vmem>>, vector<2x1x32xf32>
      %115 = vector.extract_strided_slice %105 {offsets = [0, 0, 0], sizes = [2, 1, 16], strides = [1, 1, 1]} : vector<2x1x32xf32> to vector<2x1x16xf32>
      %cst_52 = arith.constant dense<0xFF800000> : vector<2x1xf32>
      %116 = vector.multi_reduction <maximumf>, %115, %cst_52 [2] : vector<2x1x16xf32> to vector<2x1xf32>
      %117 = vector.shape_cast %116 : vector<2x1xf32> to vector<2x1x1xf32>
      %118 = vector.extract_strided_slice %105 {offsets = [0, 0, 16], sizes = [2, 1, 16], strides = [1, 1, 1]} : vector<2x1x32xf32> to vector<2x1x16xf32>
      %cst_53 = arith.constant dense<0xFF800000> : vector<2x1xf32>
      %119 = vector.multi_reduction <maximumf>, %118, %cst_53 [2] : vector<2x1x16xf32> to vector<2x1xf32>
      %120 = vector.shape_cast %119 : vector<2x1xf32> to vector<2x1x1xf32>
      %121 = vector.shape_cast %117 : vector<2x1x1xf32> to vector<2x1x1xf32>
      %122 = vector.broadcast %121 : vector<2x1x1xf32> to vector<2x1x32xf32>
      %123 = vector.shape_cast %120 : vector<2x1x1xf32> to vector<2x1x1xf32>
      %124 = vector.broadcast %123 : vector<2x1x1xf32> to vector<2x1x32xf32>
      %125 = arith.select %19, %122, %124 : vector<2x1x32xi1>, vector<2x1x32xf32>
      %126 = arith.subf %105, %125 : vector<2x1x32xf32>
      %127 = math.exp %126 : vector<2x1x32xf32>
      "tpu.trace_start"() <{level = 10 : i32, message = "bki,bij->bkj"}> : () -> ()
      %cst_54 = arith.constant dense<0.000000e+00> : vector<2x1x32xf32>
      %128 = tpu.matmul %127, %12, %cst_54 {dimension_numbers = #tpu.dot_dimension_numbers<[2], [1], [1], [2], [0, 0, 0, 1, 1, 2], [0], [0]>} : vector<2x1x32xf32>, vector<2x32x32xf32>, vector<2x1x32xf32> -> vector<2x1x32xf32>
      "tpu.trace_stop"() : () -> ()
      %129 = math.log %128 : vector<2x1x32xf32>
      %130 = arith.addf %125, %129 : vector<2x1x32xf32>
      %131 = arith.addf %130, %114 : vector<2x1x32xf32>
      %132 = arith.addi %20, %c3_i32 : i32
      %c0_i32_55 = arith.constant 0 : i32
      %133 = arith.cmpi eq, %132, %c0_i32_55 : i32
      %134 = arith.addf %14, %114 : vector<2x1x32xf32>
      %135 = arith.select %133, %134, %131 : vector<2x1x32xf32>
      %c1_i32_56 = arith.constant 1 : i32
      %136 = vector.broadcast %c1_i32_56 : i32 to vector<2x1x1xi32>
      %137 = arith.subi %16, %136 : vector<2x1x1xi32>
      %138 = vector.broadcast %132 : i32 to vector<2x1x1xi32>
      %139 = arith.cmpi eq, %138, %137 : vector<2x1x1xi32>
      %140 = vector.shape_cast %139 : vector<2x1x1xi1> to vector<2x1x1xi1>
      %141 = vector.broadcast %140 : vector<2x1x1xi1> to vector<2x1x32xi1>
      %142 = arith.select %141, %135, %112 : vector<2x1x32xi1>, vector<2x1x32xf32>
      %c4_i32 = arith.constant 4 : i32
      %c0_57 = arith.constant 0 : index
      %143 = arith.index_cast %c4_i32 : i32 to index
      %c0_58 = arith.constant 0 : index
      %144 = vector.load %arg10[%c0_57, %143, %c0_58] : memref<2x8x32xf32, #tpu.memory_space<vmem>>, vector<2x1x32xf32>
      %145 = vector.extract_strided_slice %135 {offsets = [0, 0, 0], sizes = [2, 1, 16], strides = [1, 1, 1]} : vector<2x1x32xf32> to vector<2x1x16xf32>
      %cst_59 = arith.constant dense<0xFF800000> : vector<2x1xf32>
      %146 = vector.multi_reduction <maximumf>, %145, %cst_59 [2] : vector<2x1x16xf32> to vector<2x1xf32>
      %147 = vector.shape_cast %146 : vector<2x1xf32> to vector<2x1x1xf32>
      %148 = vector.extract_strided_slice %135 {offsets = [0, 0, 16], sizes = [2, 1, 16], strides = [1, 1, 1]} : vector<2x1x32xf32> to vector<2x1x16xf32>
      %cst_60 = arith.constant dense<0xFF800000> : vector<2x1xf32>
      %149 = vector.multi_reduction <maximumf>, %148, %cst_60 [2] : vector<2x1x16xf32> to vector<2x1xf32>
      %150 = vector.shape_cast %149 : vector<2x1xf32> to vector<2x1x1xf32>
      %151 = vector.shape_cast %147 : vector<2x1x1xf32> to vector<2x1x1xf32>
      %152 = vector.broadcast %151 : vector<2x1x1xf32> to vector<2x1x32xf32>
      %153 = vector.shape_cast %150 : vector<2x1x1xf32> to vector<2x1x1xf32>
      %154 = vector.broadcast %153 : vector<2x1x1xf32> to vector<2x1x32xf32>
      %155 = arith.select %19, %152, %154 : vector<2x1x32xi1>, vector<2x1x32xf32>
      %156 = arith.subf %135, %155 : vector<2x1x32xf32>
      %157 = math.exp %156 : vector<2x1x32xf32>
      "tpu.trace_start"() <{level = 10 : i32, message = "bki,bij->bkj"}> : () -> ()
      %cst_61 = arith.constant dense<0.000000e+00> : vector<2x1x32xf32>
      %158 = tpu.matmul %157, %12, %cst_61 {dimension_numbers = #tpu.dot_dimension_numbers<[2], [1], [1], [2], [0, 0, 0, 1, 1, 2], [0], [0]>} : vector<2x1x32xf32>, vector<2x32x32xf32>, vector<2x1x32xf32> -> vector<2x1x32xf32>
      "tpu.trace_stop"() : () -> ()
      %159 = math.log %158 : vector<2x1x32xf32>
      %160 = arith.addf %155, %159 : vector<2x1x32xf32>
      %161 = arith.addf %160, %144 : vector<2x1x32xf32>
      %162 = arith.addi %20, %c4_i32 : i32
      %c0_i32_62 = arith.constant 0 : i32
      %163 = arith.cmpi eq, %162, %c0_i32_62 : i32
      %164 = arith.addf %14, %144 : vector<2x1x32xf32>
      %165 = arith.select %163, %164, %161 : vector<2x1x32xf32>
      %c1_i32_63 = arith.constant 1 : i32
      %166 = vector.broadcast %c1_i32_63 : i32 to vector<2x1x1xi32>
      %167 = arith.subi %16, %166 : vector<2x1x1xi32>
      %168 = vector.broadcast %162 : i32 to vector<2x1x1xi32>
      %169 = arith.cmpi eq, %168, %167 : vector<2x1x1xi32>
      %170 = vector.shape_cast %169 : vector<2x1x1xi1> to vector<2x1x1xi1>
      %171 = vector.broadcast %170 : vector<2x1x1xi1> to vector<2x1x32xi1>
      %172 = arith.select %171, %165, %142 : vector<2x1x32xi1>, vector<2x1x32xf32>
      %c5_i32 = arith.constant 5 : i32
      %c0_64 = arith.constant 0 : index
      %173 = arith.index_cast %c5_i32 : i32 to index
      %c0_65 = arith.constant 0 : index
      %174 = vector.load %arg10[%c0_64, %173, %c0_65] : memref<2x8x32xf32, #tpu.memory_space<vmem>>, vector<2x1x32xf32>
      %175 = vector.extract_strided_slice %165 {offsets = [0, 0, 0], sizes = [2, 1, 16], strides = [1, 1, 1]} : vector<2x1x32xf32> to vector<2x1x16xf32>
      %cst_66 = arith.constant dense<0xFF800000> : vector<2x1xf32>
      %176 = vector.multi_reduction <maximumf>, %175, %cst_66 [2] : vector<2x1x16xf32> to vector<2x1xf32>
      %177 = vector.shape_cast %176 : vector<2x1xf32> to vector<2x1x1xf32>
      %178 = vector.extract_strided_slice %165 {offsets = [0, 0, 16], sizes = [2, 1, 16], strides = [1, 1, 1]} : vector<2x1x32xf32> to vector<2x1x16xf32>
      %cst_67 = arith.constant dense<0xFF800000> : vector<2x1xf32>
      %179 = vector.multi_reduction <maximumf>, %178, %cst_67 [2] : vector<2x1x16xf32> to vector<2x1xf32>
      %180 = vector.shape_cast %179 : vector<2x1xf32> to vector<2x1x1xf32>
      %181 = vector.shape_cast %177 : vector<2x1x1xf32> to vector<2x1x1xf32>
      %182 = vector.broadcast %181 : vector<2x1x1xf32> to vector<2x1x32xf32>
      %183 = vector.shape_cast %180 : vector<2x1x1xf32> to vector<2x1x1xf32>
      %184 = vector.broadcast %183 : vector<2x1x1xf32> to vector<2x1x32xf32>
      %185 = arith.select %19, %182, %184 : vector<2x1x32xi1>, vector<2x1x32xf32>
      %186 = arith.subf %165, %185 : vector<2x1x32xf32>
      %187 = math.exp %186 : vector<2x1x32xf32>
      "tpu.trace_start"() <{level = 10 : i32, message = "bki,bij->bkj"}> : () -> ()
      %cst_68 = arith.constant dense<0.000000e+00> : vector<2x1x32xf32>
      %188 = tpu.matmul %187, %12, %cst_68 {dimension_numbers = #tpu.dot_dimension_numbers<[2], [1], [1], [2], [0, 0, 0, 1, 1, 2], [0], [0]>} : vector<2x1x32xf32>, vector<2x32x32xf32>, vector<2x1x32xf32> -> vector<2x1x32xf32>
      "tpu.trace_stop"() : () -> ()
      %189 = math.log %188 : vector<2x1x32xf32>
      %190 = arith.addf %185, %189 : vector<2x1x32xf32>
      %191 = arith.addf %190, %174 : vector<2x1x32xf32>
      %192 = arith.addi %20, %c5_i32 : i32
      %c0_i32_69 = arith.constant 0 : i32
      %193 = arith.cmpi eq, %192, %c0_i32_69 : i32
      %194 = arith.addf %14, %174 : vector<2x1x32xf32>
      %195 = arith.select %193, %194, %191 : vector<2x1x32xf32>
      %c1_i32_70 = arith.constant 1 : i32
      %196 = vector.broadcast %c1_i32_70 : i32 to vector<2x1x1xi32>
      %197 = arith.subi %16, %196 : vector<2x1x1xi32>
      %198 = vector.broadcast %192 : i32 to vector<2x1x1xi32>
      %199 = arith.cmpi eq, %198, %197 : vector<2x1x1xi32>
      %200 = vector.shape_cast %199 : vector<2x1x1xi1> to vector<2x1x1xi1>
      %201 = vector.broadcast %200 : vector<2x1x1xi1> to vector<2x1x32xi1>
      %202 = arith.select %201, %195, %172 : vector<2x1x32xi1>, vector<2x1x32xf32>
      %c6_i32 = arith.constant 6 : i32
      %c0_71 = arith.constant 0 : index
      %203 = arith.index_cast %c6_i32 : i32 to index
      %c0_72 = arith.constant 0 : index
      %204 = vector.load %arg10[%c0_71, %203, %c0_72] : memref<2x8x32xf32, #tpu.memory_space<vmem>>, vector<2x1x32xf32>
      %205 = vector.extract_strided_slice %195 {offsets = [0, 0, 0], sizes = [2, 1, 16], strides = [1, 1, 1]} : vector<2x1x32xf32> to vector<2x1x16xf32>
      %cst_73 = arith.constant dense<0xFF800000> : vector<2x1xf32>
      %206 = vector.multi_reduction <maximumf>, %205, %cst_73 [2] : vector<2x1x16xf32> to vector<2x1xf32>
      %207 = vector.shape_cast %206 : vector<2x1xf32> to vector<2x1x1xf32>
      %208 = vector.extract_strided_slice %195 {offsets = [0, 0, 16], sizes = [2, 1, 16], strides = [1, 1, 1]} : vector<2x1x32xf32> to vector<2x1x16xf32>
      %cst_74 = arith.constant dense<0xFF800000> : vector<2x1xf32>
      %209 = vector.multi_reduction <maximumf>, %208, %cst_74 [2] : vector<2x1x16xf32> to vector<2x1xf32>
      %210 = vector.shape_cast %209 : vector<2x1xf32> to vector<2x1x1xf32>
      %211 = vector.shape_cast %207 : vector<2x1x1xf32> to vector<2x1x1xf32>
      %212 = vector.broadcast %211 : vector<2x1x1xf32> to vector<2x1x32xf32>
      %213 = vector.shape_cast %210 : vector<2x1x1xf32> to vector<2x1x1xf32>
      %214 = vector.broadcast %213 : vector<2x1x1xf32> to vector<2x1x32xf32>
      %215 = arith.select %19, %212, %214 : vector<2x1x32xi1>, vector<2x1x32xf32>
      %216 = arith.subf %195, %215 : vector<2x1x32xf32>
      %217 = math.exp %216 : vector<2x1x32xf32>
      "tpu.trace_start"() <{level = 10 : i32, message = "bki,bij->bkj"}> : () -> ()
      %cst_75 = arith.constant dense<0.000000e+00> : vector<2x1x32xf32>
      %218 = tpu.matmul %217, %12, %cst_75 {dimension_numbers = #tpu.dot_dimension_numbers<[2], [1], [1], [2], [0, 0, 0, 1, 1, 2], [0], [0]>} : vector<2x1x32xf32>, vector<2x32x32xf32>, vector<2x1x32xf32> -> vector<2x1x32xf32>
      "tpu.trace_stop"() : () -> ()
      %219 = math.log %218 : vector<2x1x32xf32>
      %220 = arith.addf %215, %219 : vector<2x1x32xf32>
      %221 = arith.addf %220, %204 : vector<2x1x32xf32>
      %222 = arith.addi %20, %c6_i32 : i32
      %c0_i32_76 = arith.constant 0 : i32
      %223 = arith.cmpi eq, %222, %c0_i32_76 : i32
      %224 = arith.addf %14, %204 : vector<2x1x32xf32>
      %225 = arith.select %223, %224, %221 : vector<2x1x32xf32>
      %c1_i32_77 = arith.constant 1 : i32
      %226 = vector.broadcast %c1_i32_77 : i32 to vector<2x1x1xi32>
      %227 = arith.subi %16, %226 : vector<2x1x1xi32>
      %228 = vector.broadcast %222 : i32 to vector<2x1x1xi32>
      %229 = arith.cmpi eq, %228, %227 : vector<2x1x1xi32>
      %230 = vector.shape_cast %229 : vector<2x1x1xi1> to vector<2x1x1xi1>
      %231 = vector.broadcast %230 : vector<2x1x1xi1> to vector<2x1x32xi1>
      %232 = arith.select %231, %225, %202 : vector<2x1x32xi1>, vector<2x1x32xf32>
      %c7_i32 = arith.constant 7 : i32
      %c0_78 = arith.constant 0 : index
      %233 = arith.index_cast %c7_i32 : i32 to index
      %c0_79 = arith.constant 0 : index
      %234 = vector.load %arg10[%c0_78, %233, %c0_79] : memref<2x8x32xf32, #tpu.memory_space<vmem>>, vector<2x1x32xf32>
      %235 = vector.extract_strided_slice %225 {offsets = [0, 0, 0], sizes = [2, 1, 16], strides = [1, 1, 1]} : vector<2x1x32xf32> to vector<2x1x16xf32>
      %cst_80 = arith.constant dense<0xFF800000> : vector<2x1xf32>
      %236 = vector.multi_reduction <maximumf>, %235, %cst_80 [2] : vector<2x1x16xf32> to vector<2x1xf32>
      %237 = vector.shape_cast %236 : vector<2x1xf32> to vector<2x1x1xf32>
      %238 = vector.extract_strided_slice %225 {offsets = [0, 0, 16], sizes = [2, 1, 16], strides = [1, 1, 1]} : vector<2x1x32xf32> to vector<2x1x16xf32>
      %cst_81 = arith.constant dense<0xFF800000> : vector<2x1xf32>
      %239 = vector.multi_reduction <maximumf>, %238, %cst_81 [2] : vector<2x1x16xf32> to vector<2x1xf32>
      %240 = vector.shape_cast %239 : vector<2x1xf32> to vector<2x1x1xf32>
      %241 = vector.shape_cast %237 : vector<2x1x1xf32> to vector<2x1x1xf32>
      %242 = vector.broadcast %241 : vector<2x1x1xf32> to vector<2x1x32xf32>
      %243 = vector.shape_cast %240 : vector<2x1x1xf32> to vector<2x1x1xf32>
      %244 = vector.broadcast %243 : vector<2x1x1xf32> to vector<2x1x32xf32>
      %245 = arith.select %19, %242, %244 : vector<2x1x32xi1>, vector<2x1x32xf32>
      %246 = arith.subf %225, %245 : vector<2x1x32xf32>
      %247 = math.exp %246 : vector<2x1x32xf32>
      "tpu.trace_start"() <{level = 10 : i32, message = "bki,bij->bkj"}> : () -> ()
      %cst_82 = arith.constant dense<0.000000e+00> : vector<2x1x32xf32>
      %248 = tpu.matmul %247, %12, %cst_82 {dimension_numbers = #tpu.dot_dimension_numbers<[2], [1], [1], [2], [0, 0, 0, 1, 1, 2], [0], [0]>} : vector<2x1x32xf32>, vector<2x32x32xf32>, vector<2x1x32xf32> -> vector<2x1x32xf32>
      "tpu.trace_stop"() : () -> ()
      %249 = math.log %248 : vector<2x1x32xf32>
      %250 = arith.addf %245, %249 : vector<2x1x32xf32>
      %251 = arith.addf %250, %234 : vector<2x1x32xf32>
      %252 = arith.addi %20, %c7_i32 : i32
      %c0_i32_83 = arith.constant 0 : i32
      %253 = arith.cmpi eq, %252, %c0_i32_83 : i32
      %254 = arith.addf %14, %234 : vector<2x1x32xf32>
      %255 = arith.select %253, %254, %251 : vector<2x1x32xf32>
      %c1_i32_84 = arith.constant 1 : i32
      %256 = vector.broadcast %c1_i32_84 : i32 to vector<2x1x1xi32>
      %257 = arith.subi %16, %256 : vector<2x1x1xi32>
      %258 = vector.broadcast %252 : i32 to vector<2x1x1xi32>
      %259 = arith.cmpi eq, %258, %257 : vector<2x1x1xi32>
      %260 = vector.shape_cast %259 : vector<2x1x1xi1> to vector<2x1x1xi1>
      %261 = vector.broadcast %260 : vector<2x1x1xi1> to vector<2x1x32xi1>
      %262 = arith.select %261, %255, %232 : vector<2x1x32xi1>, vector<2x1x32xf32>
      %c8_i32_85 = arith.constant 8 : i32
      %c0_86 = arith.constant 0 : index
      %c0_87 = arith.constant 0 : index
      %c0_88 = arith.constant 0 : index
      %263 = vector.load %arg11[%c0_86, %c0_87, %c0_88] : memref<2x1x32xf32, #tpu.memory_space<vmem>>, vector<2x1x32xf32>
      tpu.vector_store %arg11[%c0_86, %c0_87, %c0_88], %255 {strides = array<i32>} : memref<2x1x32xf32, #tpu.memory_space<vmem>>, vector<2x1x32xf32>,
      %c0_89 = arith.constant 0 : index
      %c0_90 = arith.constant 0 : index
      %c0_91 = arith.constant 0 : index
      %264 = vector.load %arg12[%c0_89, %c0_90, %c0_91] : memref<2x1x32xf32, #tpu.memory_space<vmem>>, vector<2x1x32xf32>
      tpu.vector_store %arg12[%c0_89, %c0_90, %c0_91], %262 {strides = array<i32>} : memref<2x1x32xf32, #tpu.memory_space<vmem>>, vector<2x1x32xf32>,
      %c1_i32_92 = arith.constant 1 : i32
      %265 = arith.subi %1, %c1_i32_92 : i32
      %266 = arith.cmpi eq, %arg1, %265 : i32
      %267 = arith.extui %266 : i1 to i32
      %c0_i32_93 = arith.constant 0 : i32
      %268 = arith.cmpi ne, %267, %c0_i32_93 : i32
      scf.if %268 {
        %c0_94 = arith.constant 0 : index
        %c0_95 = arith.constant 0 : index
        %c0_96 = arith.constant 0 : index
        %c0_97 = arith.constant 0 : index
        %269 = vector.load %arg7[%c0_94, %c0_95, %c0_96, %c0_97] : memref<1x2x1x32xf32, #tpu.memory_space<vmem>>, vector<1x2x1x32xf32>
        %270 = vector.shape_cast %269 : vector<1x2x1x32xf32> to vector<2x1x32xf32>
        %271 = arith.addf %262, %270 : vector<2x1x32xf32>
        %272 = vector.extract_strided_slice %271 {offsets = [0, 0, 0], sizes = [2, 1, 16], strides = [1, 1, 1]} : vector<2x1x32xf32> to vector<2x1x16xf32>
        %cst_98 = arith.constant dense<0xFF800000> : vector<2x1xf32>
        %273 = vector.multi_reduction <maximumf>, %272, %cst_98 [2] : vector<2x1x16xf32> to vector<2x1xf32>
        %274 = vector.shape_cast %273 : vector<2x1xf32> to vector<2x1x1xf32>
        %275 = vector.broadcast %274 : vector<2x1x1xf32> to vector<2x1x16xf32>
        %276 = arith.subf %272, %275 : vector<2x1x16xf32>
        %277 = math.exp %276 : vector<2x1x16xf32>
        %cst_99 = arith.constant dense<0.000000e+00> : vector<2x1xf32>
        %278 = vector.multi_reduction <add>, %277, %cst_99 [2] : vector<2x1x16xf32> to vector<2x1xf32>
        %279 = vector.shape_cast %278 : vector<2x1xf32> to vector<2x1x1xf32>
        %280 = math.log %279 : vector<2x1x1xf32>
        %281 = arith.addf %274, %280 : vector<2x1x1xf32>
        %282 = vector.extract_strided_slice %271 {offsets = [0, 0, 16], sizes = [2, 1, 16], strides = [1, 1, 1]} : vector<2x1x32xf32> to vector<2x1x16xf32>
        %cst_100 = arith.constant dense<0xFF800000> : vector<2x1xf32>
        %283 = vector.multi_reduction <maximumf>, %282, %cst_100 [2] : vector<2x1x16xf32> to vector<2x1xf32>
        %284 = vector.shape_cast %283 : vector<2x1xf32> to vector<2x1x1xf32>
        %285 = vector.broadcast %284 : vector<2x1x1xf32> to vector<2x1x16xf32>
        %286 = arith.subf %282, %285 : vector<2x1x16xf32>
        %287 = math.exp %286 : vector<2x1x16xf32>
        %cst_101 = arith.constant dense<0.000000e+00> : vector<2x1xf32>
        %288 = vector.multi_reduction <add>, %287, %cst_101 [2] : vector<2x1x16xf32> to vector<2x1xf32>
        %289 = vector.shape_cast %288 : vector<2x1xf32> to vector<2x1x1xf32>
        %290 = math.log %289 : vector<2x1x1xf32>
        %291 = arith.addf %284, %290 : vector<2x1x1xf32>
        %292 = tpu.iota {dimensions = array<i32: 2>} : vector<2x1x2xi32>
        %c0_i32_102 = arith.constant 0 : i32
        %293 = vector.broadcast %c0_i32_102 : i32 to vector<2x1x2xi32>
        %294 = arith.cmpi eq, %292, %293 : vector<2x1x2xi32>
        %295 = vector.shape_cast %281 : vector<2x1x1xf32> to vector<2x1x1xf32>
        %296 = vector.broadcast %295 : vector<2x1x1xf32> to vector<2x1x2xf32>
        %297 = vector.shape_cast %291 : vector<2x1x1xf32> to vector<2x1x1xf32>
        %298 = vector.broadcast %297 : vector<2x1x1xf32> to vector<2x1x2xf32>
        %299 = arith.select %294, %296, %298 : vector<2x1x2xi1>, vector<2x1x2xf32>
        %300 = vector.shape_cast %299 : vector<2x1x2xf32> to vector<1x2x1x2xf32>
        %c0_103 = arith.constant 0 : index
        %c0_104 = arith.constant 0 : index
        %c0_105 = arith.constant 0 : index
        %c0_106 = arith.constant 0 : index
        %301 = vector.load %arg9[%c0_103, %c0_104, %c0_105, %c0_106] : memref<1x2x1x2xf32, #tpu.memory_space<vmem>>, vector<1x2x1x2xf32>
        tpu.vector_store %arg9[%c0_103, %c0_104, %c0_105, %c0_106], %300 {strides = array<i32>} : memref<1x2x1x2xf32, #tpu.memory_space<vmem>>, vector<1x2x1x2xf32>,
      } else {
      }
    } else {
    }
    return
  }
  func.func @transform_0(%arg0: i32, %arg1: i32, %arg2: memref<1xi32, #tpu.memory_space<smem>>) -> (i32, i32, i32, i32) {
    %0 = arith.index_cast %arg0 : i32 to index
    %1 = memref.load %arg2[%0] : memref<1xi32, #tpu.memory_space<smem>>
    %c1_i32 = arith.constant 1 : i32
    %2 = arith.subi %1, %c1_i32 : i32
    %3 = arith.minsi %arg1, %2 : i32
    %c0_i32 = arith.constant 0 : i32
    %c0_i32_0 = arith.constant 0 : i32
    %c0_i32_1 = arith.constant 0 : i32
    return %arg0, %c0_i32, %3, %c0_i32_0 : i32, i32, i32, i32
  }
  func.func @transform_1(%arg0: i32, %arg1: i32, %arg2: memref<1xi32, #tpu.memory_space<smem>>) -> (i32, i32, i32, i32) {
    %c0_i32 = arith.constant 0 : i32
    %c0_i32_0 = arith.constant 0 : i32
    %c0_i32_1 = arith.constant 0 : i32
    %c0_i32_2 = arith.constant 0 : i32
    return %arg0, %c0_i32, %c0_i32_0, %c0_i32_1 : i32, i32, i32, i32
  }
  func.func @transform_2(%arg0: i32, %arg1: i32, %arg2: memref<1xi32, #tpu.memory_space<smem>>) -> (i32, i32, i32, i32) {
    %c0_i32 = arith.constant 0 : i32
    %c0_i32_0 = arith.constant 0 : i32
    %c0_i32_1 = arith.constant 0 : i32
    %c0_i32_2 = arith.constant 0 : i32
    return %arg0, %c0_i32, %c0_i32_0, %c0_i32_1 : i32, i32, i32, i32
  }
  func.func @transform_3(%arg0: i32, %arg1: i32, %arg2: memref<1xi32, #tpu.memory_space<smem>>) -> (i32, i32, i32, i32) {
    %c0_i32 = arith.constant 0 : i32
    %c0_i32_0 = arith.constant 0 : i32
    %c0_i32_1 = arith.constant 0 : i32
    %c0_i32_2 = arith.constant 0 : i32
    return %arg0, %c0_i32, %c0_i32_0, %c0_i32_1 : i32, i32, i32, i32
  }
  func.func @transform_4(%arg0: i32, %arg1: i32, %arg2: memref<1xi32, #tpu.memory_space<smem>>) -> (i32, i32, i32, i32) {
    %c0_i32 = arith.constant 0 : i32
    %c0_i32_0 = arith.constant 0 : i32
    %c0_i32_1 = arith.constant 0 : i32
    %c0_i32_2 = arith.constant 0 : i32
    return %arg0, %c0_i32, %c0_i32_0, %c0_i32_1 : i32, i32, i32, i32
  }
  func.func @transform_5(%arg0: i32, %arg1: i32, %arg2: memref<1xi32, #tpu.memory_space<smem>>) -> (i32, i32, i32, i32) {
    %c0_i32 = arith.constant 0 : i32
    %c0_i32_0 = arith.constant 0 : i32
    %c0_i32_1 = arith.constant 0 : i32
    %c0_i32_2 = arith.constant 0 : i32
    return %arg0, %c0_i32, %c0_i32_0, %c0_i32_1 : i32, i32, i32, i32
  }
  func.func @transform_6(%arg0: i32, %arg1: i32, %arg2: memref<1xi32, #tpu.memory_space<smem>>) -> (i32, i32, i32, i32) {
    %c0_i32 = arith.constant 0 : i32
    %c0_i32_0 = arith.constant 0 : i32
    %c0_i32_1 = arith.constant 0 : i32
    %c0_i32_2 = arith.constant 0 : i32
    return %arg0, %c0_i32, %c0_i32_0, %c0_i32_1 : i32, i32, i32, i32
  }
}

</mosaic_0001>

<bundles_post_ra>
// kernel: tpu_custom_call.1
= control target key start
LH: loop header
LB: loop body
LE: loop exit
PB: predicated region body
PF: predicated region fallthrough
CT: control target
= control target key end

     0   :  { %13 = vsyncpa [#allocation8], 0  ;;  %s3173_s0 = inlined_call_operand.<no memory space> [shape: s32[1], index: 0, kind: input, shape index: {}]   ;;  %s3174_s1 = inlined_call_operand.hbm [shape: f32[1,2,8,32], index: 1, kind: input, shape index: {}]   ;;  %s3175_s2 = inlined_call_operand.hbm [shape: f32[1,2,32,32], index: 2, kind: input, shape index: {}]   ;;  %s3176_s3 = inlined_call_operand.hbm [shape: f32[1,2,32,32], index: 3, kind: input, shape index: {}]   ;;  %s3177_s4 = inlined_call_operand.vmem [shape: f32[1,2,1,32], index: 4, kind: input, shape index: {}]   ;;  %s3178_s5 = inlined_call_operand.vmem [shape: f32[1,2,1,32], index: 5, kind: input, shape index: {}]   ;;  %s3179_s6 = inlined_call_operand.vmem [shape: s32[1,2,1,1], index: 6, kind: input, shape index: {}]   ;;  %s3180_s7 = inlined_call_operand.hbm [shape: f32[1,2,1,2], index: 7, kind: output, shape index: {}]  }
   0x1   :  { %14 = vsyncpa [#allocation11], 0 }
   0x2   :  { %15 = vsyncpa [#allocation9], 0  ;;  %s2715_s26 = sadd.s32 4294967295, %s3173_s0  ;;  %s2659_s27 = smov [#allocation10]  }
   0x3   :  { %s39_s28 = sshll.u32 %s2659_s27, 4  ;;  %p2033_p0 = scmp.gt.s32.totalorder %s2715_s26, 0  ;;  %s40_s28 = int_to_ptr.vmem [resolvable:$true] %s39_s28 }
   0x4   :  { %s2563_s8 = scalar_lea.hbm %s3175_s2, 1024 }
   0x5   :  { %p2564_p1 = scmp.ne.s32.totalorder %s3175_s2, %s2563_s8  ;;  %p2567_p2 = scmp.lt.u32.totalorder %s2563_s8, %s3175_s2 }
   0x7   :  { %p2569_p3 = pnand %p2567_p2, %p2564_p1 }
   0x9   :  { %2572 = shalt.err (!%p2569_p3)
}
   0xa   :  { %s2573_s13 = scalar_lea.vmem %s40_s28, 1024  ;;  %p2578_p5 = scmp.lt.s32.totalorder %s40_s28, %s40_s28 }
   0xb   :  { %p2574_p4 = scmp.ne.s32.totalorder %s40_s28, %s2573_s13  ;;  %p2579_p6 = scmp.lt.s32.totalorder %s2573_s13, %s2573_s13 }
   0xd   :  { %p2580_p7 = por %p2579_p6, %p2578_p5 }
   0xf   :  { %p2581_p8 = pnand %p2580_p7, %p2574_p4 }
  0x11   :  { %2584 = shalt.err (!%p2581_p8)
}
  0x12   :  { %s2660_s14 = smov 128   ;;  %s2661_s15 = smov 8  }
  0x13   :  { %45 = dma.hbm_to_vmem [thread:$0]  %s3175_s2, 1024, %s40_s28, [#allocation11], %s2660_s14, %s2660_s14, %s2661_s15  }
  0x14   :  { %s21_s18 = scalar_select %p2033_p0, 0, %s2715_s26 }
  0x15   :  { %s2662_s19 = smov [#allocation7]   ;;  %s2663_s25 = smov [#allocation12]  }
  0x16   :  { %s27_s20 = sshll.u32 %s2662_s19, 4  ;;  %s2034_s21 = sshll.u32 %s21_s18, 7  ;;  %s28_s20 = int_to_ptr.vmem [resolvable:$true] %s27_s20 }
  0x17   :  { %s26_s24 = scalar_lea.hbm %s3174_s1, %s2034_s21  ;;  %s51_s27 = sshll.u32 %s2663_s25, 4  ;;  %s52_s27 = int_to_ptr.vmem [resolvable:$true] %s51_s27 }
  0x18   :  { %s2585_s29 = scalar_lea.hbm %s26_s24, 256  ;;  %s2587_s9 = scalar_lea.hbm %s3174_s1, 256 }
  0x19   :  { %p2586_p9 = scmp.ne.s32.totalorder %s26_s24, %s2585_s29  ;;  %p2588_p10 = scmp.lt.u32.totalorder %s26_s24, %s3174_s1 }
  0x1a   :  { %p2589_p11 = scmp.lt.u32.totalorder %s2587_s9, %s2585_s29  ;;  %p2591_p13 = scmp.lt.u32.totalorder %s2585_s29, %s26_s24 }
  0x1c   :  { %p2590_p12 = por %p2589_p11, %p2588_p10 }
  0x1e   :  { %p2592_p0 = por %p2591_p13, %p2590_p12 }
  0x20   :  { %p2593_p1 = pnand %p2592_p0, %p2586_p9 }
  0x22   :  { %2596 = shalt.err (!%p2593_p1)
}
  0x23   :  { %s2597_s28 = scalar_lea.vmem %s28_s20, 256  ;;  %p2602_p3 = scmp.lt.s32.totalorder %s28_s20, %s28_s20 }
  0x24   :  { %p2598_p2 = scmp.ne.s32.totalorder %s28_s20, %s2597_s28  ;;  %p2603_p4 = scmp.lt.s32.totalorder %s2597_s28, %s2597_s28 }
  0x26   :  { %p2604_p5 = por %p2603_p4, %p2602_p3 }
  0x28   :  { %p2605_p6 = pnand %p2604_p5, %p2598_p2 }
  0x2a   :  { %2608 = shalt.err (!%p2605_p6)
}
  0x2b   :  { %33 = dma.hbm_to_vmem [thread:$0]  %s26_s24, 256, %s28_s20, [#allocation8], %s2660_s14, %s2660_s14, %s2661_s15  }
  0x2c   :  { %s2609_s12 = scalar_lea.hbm %s3176_s3, 1024 }
  0x2d   :  { %p2610_p7 = scmp.ne.s32.totalorder %s3176_s3, %s2609_s12  ;;  %p2613_p8 = scmp.lt.u32.totalorder %s2609_s12, %s3176_s3 }
  0x2f   :  { %p2615_p9 = pnand %p2613_p8, %p2610_p7 }
  0x31   :  { %2618 = shalt.err (!%p2615_p9)
}
  0x32   :  { %s2619_s19 = scalar_lea.vmem %s52_s27, 1024  ;;  %p2624_p11 = scmp.lt.s32.totalorder %s52_s27, %s52_s27 }
  0x33   :  { %p2620_p10 = scmp.ne.s32.totalorder %s52_s27, %s2619_s19  ;;  %p2625_p12 = scmp.lt.s32.totalorder %s2619_s19, %s2619_s19 }
  0x35   :  { %p2626_p13 = por %p2625_p12, %p2624_p11 }
  0x37   :  { %p2627_p0 = pnand %p2626_p13, %p2620_p10 }
  0x39   :  { %2630 = shalt.err (!%p2627_p0)
}
  0x3a   :  { %57 = dma.hbm_to_vmem [thread:$0]  %s3176_s3, 1024, %s52_s27, [#allocation11], %s2660_s14, %s2660_s14, %s2661_s15  }
  0x3b   :  { %2653 = dma.done.wait [#allocation8], 256  }
  0x3c   :  { %2654 = vsyncadd [#allocation8], 4294967040 }
  0x3d   :  { %2655 = dma.done.wait [#allocation11], 2048  }
  0x3e   :  { %2656 = vsyncadd [#allocation11], 4294965248  ;;  %p2036_p1 = scmp.le.s32.totalorder %s3173_s0, 0 }
  0x3f   :  { %v84_v0 = vld [vmem:[#allocation10] sm:$0xff] (!%p2036_p1)  ;;  %v85_v1 = vld [vmem:[#allocation10 + $0x8] sm:$0xff] (!%p2036_p1)  ;;  %v2664_v3 = vmov (!%p2036_p1), 0.0|0.0   ;;  %v86_v6 = vld [vmem:[#allocation10 + $0x10] sm:$0xff] (!%p2036_p1)  ;;  %vm2665_vm0 = vmmov (!%p2036_p1), 0   ;;  %v2666_v11 = vmov (!%p2036_p1), 0.0   ;;  %v253_v28 = vlaneseq (!%p2036_p1) }
  0x40   :  { %81 = sbr.rel (%p2036_p1) target bundleno = 3481 (0xd99), region = 41  ;;  %v88_v2 = vld [vmem:[#allocation10 + $0x20] sm:$0xff] (!%p2036_p1)  ;;  %2364 = vmatprep.subr.bf16.mxu0 (!%p2036_p1), %v2664_v3  ;;  %2370 = vmatprep.subr.bf16.mxu1 (!%p2036_p1), %v2664_v3  ;;  %v2365_v4 = vpack.c.bf16 (!%p2036_p1), %v85_v1, %v84_v0  ;;  %v89_v5 = vld [vmem:[#allocation10 + $0x28] sm:$0xff] (!%p2036_p1)  ;;  %v87_v7 = vld [vmem:[#allocation10 + $0x18] sm:$0xff] (!%p2036_p1)  ;;  %vm92_vm1 = vcmask (!%p2036_p1), 261120   ;;  %vm270_vm2 = vcmask (!%p2036_p1), 254080  }
  0x41   :  { %v2371_v8 = vpack.c.bf16 (!%p2036_p1), %v89_v5, %v88_v2  ;;  %v90_v9 = vld [vmem:[#allocation10 + $0x30] sm:$0xff] (!%p2036_p1)  ;;  %v91_v10 = vld [vmem:[#allocation10 + $0x38] sm:$0xff] (!%p2036_p1)  ;;  %2174 = vmatprep.mubr.msk.f32.mxu0 (!%p2036_p1), %vm2665_vm0, %v2666_v11  ;;  %2185 = vmatprep.mubr.msk.f32.mxu1 (!%p2036_p1), %vm2665_vm0, %v2666_v11  ;;  %v2368_v12 = vpack.c.bf16 (!%p2036_p1), %v87_v7, %v86_v6  ;;  %v257_v16 = vld [vmem:[#allocation3] sm:$0x1] (!%p2036_p1)  ;;  %vm263_vm3 = vcmask (!%p2036_p1), 122880   ;;  %v2801_v34 = vand.u32 (!%p2036_p1), 127, %v253_v28 }
  0x42   :  { %2366 = vmatpush3.bf16.msra.mxu0 (!%p2036_p1), %v2365_v4  ;;  %v2374_v13 = vpack.c.bf16 (!%p2036_p1), %v91_v10, %v90_v9  ;;  %v82_v14 = vld [vmem:[#allocation7] sm:$0xff] (!%p2036_p1)  ;;  %v83_v15 = vld [vmem:[#allocation7 + $0x8] sm:$0xff] (!%p2036_p1)  ;;  %v258_v17 = vld [vmem:[#allocation3 + $0x1] sm:$0x1] (!%p2036_p1)  ;;  %v271_v18 = vsel (!%p2036_p1), %vm270_vm2, %v257_v16, -inf  ;;  %v264_v19 = vsel (!%p2036_p1), %vm263_vm3, %v257_v16, -inf }
  0x43   :  { %2372 = vmatpush3.bf16.msra.mxu1 (!%p2036_p1), %v2371_v8  ;;  %2367 = vmatprep.subr.bf16.mxu0 (!%p2036_p1), %v2664_v3  ;;  %v274_v20 = vsel (!%p2036_p1), %vm270_vm2, %v258_v17, -inf  ;;  %v267_v21 = vsel (!%p2036_p1), %vm263_vm3, %v258_v17, -inf  ;;  %v249_v26 = vld [vmem:[%s3177_s4] sm:$0x1] (!%p2036_p1)  ;;  %v250_v27 = vld [vmem:[%s3177_s4 + $0x1] sm:$0x1] (!%p2036_p1) }
  0x44   :  { %2373 = vmatprep.subr.bf16.mxu1 (!%p2036_p1), %v2664_v3  ;;  %272 = vmax.xlane.f32.xlu1 (!%p2036_p1), %v271_v18  ;;  %vm255_vm4 = vcmp.lt.s32.totalorder (!%p2036_p1), %v2801_v34, 16  ;;  %v241_v47 = vld [vmem:[#allocation12] sm:$0xff] (!%p2036_p1)  ;;  %v242_v48 = vld [vmem:[#allocation12 + $0x8] sm:$0xff] (!%p2036_p1)  ;;  %v243_v51 = vld [vmem:[#allocation12 + $0x10] sm:$0xff] (!%p2036_p1)  ;;  %p2075_p2 = scmp.ne.s32.totalorder (!%p2036_p1), %s2715_s26, 0 }
  0x45   :  { %265 = vmax.xlane.f32.xlu0 (!%p2036_p1), %v264_v19  ;;  %v2814_v50 = vpack.c.bf16 (!%p2036_p1), %v242_v48, %v241_v47  ;;  %v244_v52 = vld [vmem:[#allocation12 + $0x18] sm:$0xff] (!%p2036_p1)  ;;  %v245_v53 = vld [vmem:[#allocation12 + $0x20] sm:$0xff] (!%p2036_p1)  ;;  %v246_v55 = vld [vmem:[#allocation12 + $0x28] sm:$0xff] (!%p2036_p1) }
  0x46   :  { %2369 = vmatpush3.bf16.msra.mxu0 (!%p2036_p1), %v2368_v12  ;;  %v2818_v54 = vpack.c.bf16 (!%p2036_p1), %v244_v52, %v243_v51  ;;  %v2820_v56 = vpack.c.bf16 (!%p2036_p1), %v246_v55, %v245_v53  ;;  %v247_v57 = vld [vmem:[#allocation12 + $0x30] sm:$0xff] (!%p2036_p1)  ;;  %v248_v58 = vld [vmem:[#allocation12 + $0x38] sm:$0xff] (!%p2036_p1) }
  0x47   :  { %2375 = vmatpush3.bf16.msra.mxu1 %v2374_v13  ;;  %2376 = vmatprep.subr.bf16.mxu0 %v2664_v3  ;;  %v2826_v60 = vpack.c.bf16 %v248_v58, %v247_v57 }
  0x48   :  { %2382 = vmatprep.subr.bf16.mxu1 %v2664_v3  ;;  %275 = vmax.xlane.f32.xlu1 %v274_v20 }
  0x49   :  { %2175 = vmatmul.mubr.msk.f32.vlgmr.msra.gmra.mrb[0].mxu0 %vm92_vm1, %v82_v14  ;;  %268 = vmax.xlane.f32.xlu0 %v267_v21 }
  0x4a   :  { %2186 = vmatmul.mubr.msk.f32.vlgmr.msra.gmra.mrb[0].mxu1 %vm92_vm1, %v83_v15  ;;  %2196 = vmatprep.mubr.msk.f32.mxu0 %vm2665_vm0, %v2666_v11 }
  0x4b   :  { %2207 = vmatprep.mubr.msk.f32.mxu1 %vm2665_vm0, %v2666_v11  ;;  %2378 = vmatpush3.bf16.msra.mxu0 %v2814_v50 }
  0x4c   :  { %2379 = vmatprep.subr.bf16.mxu0 %v2664_v3  ;;  %2384 = vmatpush3.bf16.msra.mxu1 %v2820_v56 }
  0x4d   :  { %2385 = vmatprep.subr.bf16.mxu1 %v2664_v3 }
  0x4f   :  { %2381 = vmatpush3.bf16.msra.mxu0 %v2818_v54 }
  0x50   :  { %2388 = vmatprep.subr.bf16.mxu0 %v2664_v3  ;;  %2387 = vmatpush3.bf16.msra.mxu1 %v2826_v60 }
  0x51   :  { %2394 = vmatprep.subr.bf16.mxu1 %v2664_v3 }
  0xd1   :  { %v273_v38 = vpop.xlane.xlu1 %272 }
  0xd2   :  { %v266_v39 = vpop.xlane.xlu0 %265 }
  0xd3   :  { %v277_v40 = vsel %vm255_vm4, %v266_v39, %v273_v38 }
  0xd4   :  { %v279_v41 = vsub.f32 %v257_v16, %v277_v40 }
  0xd5   :  { %v276_v43 = vpop.xlane.xlu1 %275 }
  0xd6   :  { %v281_v42 = vmul.f32 1.442695, %v279_v41  ;;  %v269_v44 = vpop.xlane.xlu0 %268 }
  0xd7   :  { %v278_v45 = vsel %vm255_vm4, %v269_v44, %v276_v43 }
  0xd8   :  { %2487 = vpow2.f32 %v281_v42  ;;  %v280_v46 = vsub.f32 %v258_v17, %v278_v45 }
  0xda   :  { %v283_v49 = vmul.f32 1.442695, %v280_v46 }
  0xdc   :  { %2489 = vpow2.f32 %v283_v49 }
  0xe2   :  { %v2488_v59 = vpop.eup %2487 }
  0xe3   :  { %2197 = vmatmul.mubr.msk.f32.vlgmr.msra.gmra.mrb[2].mxu0 %vm92_vm1, %v2488_v59 }
  0xe4   :  { %2390 = vmatpush3.bf16.msra.mxu0 %v2814_v50  ;;  %2218 = vmatprep.mubr.msk.f32.mxu0 %vm2665_vm0, %v2666_v11 }
  0xe5   :  { %2391 = vmatprep.subr.bf16.mxu0 %v2664_v3 }
  0xe6   :  { %v2490_v61 = vpop.eup %2489 }
  0xe7   :  { %2208 = vmatmul.mubr.msk.f32.vlgmr.msra.gmra.mrb[2].mxu1 %vm92_vm1, %v2490_v61 }
  0xe8   :  { %2393 = vmatpush3.bf16.msra.mxu0 %v2818_v54  ;;  %2396 = vmatpush3.bf16.msra.mxu1 %v2820_v56 }
  0xe9   :  { %2229 = vmatprep.mubr.msk.f32.mxu1 %vm2665_vm0, %v2666_v11  ;;  %2397 = vmatprep.subr.bf16.mxu1 %v2664_v3 }
  0xea   :  { %2400 = vmatprep.subr.bf16.mxu0 %v2664_v3 }
  0xec   :  { %2399 = vmatpush3.bf16.msra.mxu1 %v2826_v60 }
  0xed   :  { %2406 = vmatprep.subr.bf16.mxu1 %v2664_v3 }
 0x11c   :  { %v162_v22 = vpop.f32.mrb[0].mxu0 }
 0x11d   :  { %239 = vst.msk [vmem:[#allocation2] sm:$0xff] %vm92_vm1, %v162_v22  ;;  %v235_v23 = vpop.f32.mrb[0].mxu1  ;;  %v2176_v24 = vpop.f32.mrb[1].mxu0 }
 0x11e   :  { %240 = vst.msk [vmem:[#allocation2 + $0x8] sm:$0xff] %vm92_vm1, %v235_v23  ;;  %v2187_v25 = vpop.f32.mrb[1].mxu1 }
 0x124   :  { %v261_v29 = vld [vmem:[#allocation2] sm:$0x1]  ;;  %v472_v25 = vld [vmem:[#allocation2 + $0x1] sm:$0x1] }
 0x125   :  { %v262_v30 = vld [vmem:[#allocation2 + $0x8] sm:$0x1]  ;;  %v2794_v31 = vadd.f32 %v261_v29, %v249_v26  ;;  %v473_v29 = vld [vmem:[#allocation2 + $0x9] sm:$0x1] }
 0x126   :  { %v2796_v32 = vadd.f32 %v262_v30, %v250_v27 }
 0x127   :  { %v474_v33 = vsel %vm263_vm3, %v2794_v31, -inf  ;;  %v480_v36 = vsel %vm270_vm2, %v2794_v31, -inf }
 0x128   :  { %v477_v35 = vsel %vm263_vm3, %v2796_v32, -inf  ;;  %475 = vmax.xlane.f32.xlu0 %v474_v33  ;;  %v483_v37 = vsel %vm270_vm2, %v2796_v32, -inf }
 0x129   :  { %478 = vmax.xlane.f32.xlu1 %v477_v35 }
 0x12c   :  { %481 = vmax.xlane.f32.xlu0 %v480_v36 }
 0x12d   :  { %484 = vmax.xlane.f32.xlu1 %v483_v37 }
 0x1b5   :  { %v476_v62 = vpop.xlane.xlu0 %475 }
 0x1b6   :  { %v479_v63 = vpop.xlane.xlu1 %478  ;;  %v354_v12 = vpop.f32.mrb[2].mxu0 }
 0x1b7   :  { %v2198_v13 = vpop.f32.mrb[3].mxu0 }
 0x1b9   :  { %v482_v0 = vpop.xlane.xlu0 %481 }
 0x1ba   :  { %v485_v1 = vpop.xlane.xlu1 %484  ;;  %v486_v2 = vsel %vm255_vm4, %v476_v62, %v482_v0  ;;  %v427_v14 = vpop.f32.mrb[2].mxu1 }
 0x1bb   :  { %v487_v4 = vsel %vm255_vm4, %v479_v63, %v485_v1  ;;  %v488_v5 = vsub.f32 %v2794_v31, %v486_v2  ;;  %v2209_v15 = vpop.f32.mrb[3].mxu1  ;;  %v680_v63 = vld [vmem:[#allocation2 + $0x2] sm:$0x1] }
 0x1bc   :  { %v489_v6 = vsub.f32 %v2796_v32, %v487_v4 }
 0x1bd   :  { %v490_v7 = vmul.f32 1.442695, %v488_v5 }
 0x1be   :  { %v492_v8 = vmul.f32 1.442695, %v489_v6 }
 0x1bf   :  { %2491 = vpow2.f32 %v490_v7 }
 0x1c0   :  { %2493 = vpow2.f32 %v492_v8 }
 0x1c9   :  { %v2492_v9 = vpop.eup %2491 }
 0x1ca   :  { %v2494_v10 = vpop.eup %2493  ;;  %2219 = vmatmul.mubr.msk.f32.vlgmr.msra.gmra.mrb[4].mxu0 %vm92_vm1, %v2492_v9 }
 0x1cb   :  { %2230 = vmatmul.mubr.msk.f32.vlgmr.msra.gmra.mrb[4].mxu1 %vm92_vm1, %v2494_v10  ;;  %2402 = vmatpush3.bf16.msra.mxu0 %v2814_v50 }
 0x1cc   :  { %2408 = vmatpush3.bf16.msra.mxu1 %v2820_v56  ;;  %2403 = vmatprep.subr.bf16.mxu0 %v2664_v3 }
 0x1cd   :  { %2409 = vmatprep.subr.bf16.mxu1 %v2664_v3  ;;  %2240 = vmatprep.mubr.msk.f32.mxu0 %vm2665_vm0, %v2666_v11 }
 0x1ce   :  { %2251 = vmatprep.mubr.msk.f32.mxu1 %vm2665_vm0, %v2666_v11 }
 0x1cf   :  { %2405 = vmatpush3.bf16.msra.mxu0 %v2818_v54 }
 0x1d0   :  { %2411 = vmatpush3.bf16.msra.mxu1 %v2826_v60  ;;  %2412 = vmatprep.subr.bf16.mxu0 %v2664_v3 }
 0x1d1   :  { %2418 = vmatprep.subr.bf16.mxu1 %v2664_v3 }
 0x29d   :  { %v563_v16 = vpop.f32.mrb[4].mxu0 }
 0x29e   :  { %2495 = vlog2.f32 %v563_v16  ;;  %v636_v17 = vpop.f32.mrb[4].mxu1  ;;  %v2220_v18 = vpop.f32.mrb[5].mxu0 }
 0x29f   :  { %2497 = vlog2.f32 %v636_v17  ;;  %v2231_v19 = vpop.f32.mrb[5].mxu1 }
 0x2a8   :  { %v2496_v20 = vpop.eup %2495 }
 0x2a9   :  { %v2498_v21 = vpop.eup %2497  ;;  %v641_v22 = vmul.f32 0.6931472, %v2496_v20 }
 0x2aa   :  { %v643_v23 = vmul.f32 0.6931472, %v2498_v21 }
 0x2ab   :  { %v644_v24 = vadd.f32 %v641_v22, %v486_v2  ;;  %v681_v2 = vld [vmem:[#allocation2 + $0xa] sm:$0x1] }
 0x2ac   :  { %v645_v26 = vadd.f32 %v643_v23, %v487_v4 }
 0x2ad   :  { %v2864_v27 = vadd.f32 %v644_v24, %v472_v25 }
 0x2ae   :  { %v2866_v30 = vadd.f32 %v645_v26, %v473_v29 }
 0x2af   :  { %v682_v33 = vsel %vm263_vm3, %v2864_v27, -inf  ;;  %v688_v36 = vsel %vm270_vm2, %v2864_v27, -inf }
 0x2b0   :  { %v685_v35 = vsel %vm263_vm3, %v2866_v30, -inf  ;;  %683 = vmax.xlane.f32.xlu0 %v682_v33  ;;  %v691_v37 = vsel %vm270_vm2, %v2866_v30, -inf }
 0x2b1   :  { %686 = vmax.xlane.f32.xlu1 %v685_v35 }
 0x2b4   :  { %689 = vmax.xlane.f32.xlu0 %v688_v36 }
 0x2b5   :  { %692 = vmax.xlane.f32.xlu1 %v691_v37  ;;  %v888_v37 = vld [vmem:[#allocation2 + $0x3] sm:$0x1] }
 0x33d   :  { %v684_v38 = vpop.xlane.xlu0 %683 }
 0x33e   :  { %v687_v39 = vpop.xlane.xlu1 %686 }
 0x341   :  { %v690_v40 = vpop.xlane.xlu0 %689 }
 0x342   :  { %v693_v41 = vpop.xlane.xlu1 %692  ;;  %v694_v42 = vsel %vm255_vm4, %v684_v38, %v690_v40  ;;  %v889_v40 = vld [vmem:[#allocation2 + $0xb] sm:$0x1] }
 0x343   :  { %v695_v43 = vsel %vm255_vm4, %v687_v39, %v693_v41  ;;  %v696_v44 = vsub.f32 %v2864_v27, %v694_v42 }
 0x344   :  { %v697_v45 = vsub.f32 %v2866_v30, %v695_v43 }
 0x345   :  { %v698_v46 = vmul.f32 1.442695, %v696_v44 }
 0x346   :  { %v700_v47 = vmul.f32 1.442695, %v697_v45 }
 0x347   :  { %2499 = vpow2.f32 %v698_v46 }
 0x348   :  { %2501 = vpow2.f32 %v700_v47 }
 0x351   :  { %v2500_v48 = vpop.eup %2499 }
 0x352   :  { %v2502_v49 = vpop.eup %2501  ;;  %2241 = vmatmul.mubr.msk.f32.vlgmr.msra.gmra.mrb[6].mxu0 %vm92_vm1, %v2500_v48 }
 0x353   :  { %2252 = vmatmul.mubr.msk.f32.vlgmr.msra.gmra.mrb[6].mxu1 %vm92_vm1, %v2502_v49  ;;  %2414 = vmatpush3.bf16.msra.mxu0 %v2814_v50 }
 0x354   :  { %2420 = vmatpush3.bf16.msra.mxu1 %v2820_v56  ;;  %2415 = vmatprep.subr.bf16.mxu0 %v2664_v3 }
 0x355   :  { %2421 = vmatprep.subr.bf16.mxu1 %v2664_v3  ;;  %2262 = vmatprep.mubr.msk.f32.mxu0 %vm2665_vm0, %v2666_v11 }
 0x356   :  { %2273 = vmatprep.mubr.msk.f32.mxu1 %vm2665_vm0, %v2666_v11 }
 0x357   :  { %2417 = vmatpush3.bf16.msra.mxu0 %v2818_v54 }
 0x358   :  { %2423 = vmatpush3.bf16.msra.mxu1 %v2826_v60  ;;  %2424 = vmatprep.subr.bf16.mxu0 %v2664_v3 }
 0x359   :  { %2430 = vmatprep.subr.bf16.mxu1 %v2664_v3 }
 0x425   :  { %v771_v51 = vpop.f32.mrb[6].mxu0 }
 0x426   :  { %2503 = vlog2.f32 %v771_v51  ;;  %v844_v52 = vpop.f32.mrb[6].mxu1  ;;  %v2242_v53 = vpop.f32.mrb[7].mxu0 }
 0x427   :  { %2505 = vlog2.f32 %v844_v52  ;;  %v2253_v55 = vpop.f32.mrb[7].mxu1 }
 0x430   :  { %v2504_v57 = vpop.eup %2503 }
 0x431   :  { %v2506_v58 = vpop.eup %2505  ;;  %v849_v59 = vmul.f32 0.6931472, %v2504_v57 }
 0x432   :  { %v851_v61 = vmul.f32 0.6931472, %v2506_v58 }
 0x433   :  { %v852_v62 = vadd.f32 %v849_v59, %v694_v42 }
 0x434   :  { %v853_v0 = vadd.f32 %v851_v61, %v695_v43 }
 0x435   :  { %v2896_v1 = vadd.f32 %v852_v62, %v680_v63 }
 0x436   :  { %v2898_v4 = vadd.f32 %v853_v0, %v681_v2 }
 0x437   :  { %v890_v5 = vsel %vm263_vm3, %v2896_v1, -inf  ;;  %v896_v7 = vsel %vm270_vm2, %v2896_v1, -inf }
 0x438   :  { %v893_v6 = vsel %vm263_vm3, %v2898_v4, -inf  ;;  %891 = vmax.xlane.f32.xlu0 %v890_v5  ;;  %v899_v8 = vsel %vm270_vm2, %v2898_v4, -inf }
 0x439   :  { %894 = vmax.xlane.f32.xlu1 %v893_v6 }
 0x43c   :  { %897 = vmax.xlane.f32.xlu0 %v896_v7 }
 0x43d   :  { %900 = vmax.xlane.f32.xlu1 %v899_v8 }
 0x4c5   :  { %v892_v9 = vpop.xlane.xlu0 %891 }
 0x4c6   :  { %v895_v10 = vpop.xlane.xlu1 %894 }
 0x4c9   :  { %v898_v12 = vpop.xlane.xlu0 %897 }
 0x4ca   :  { %v901_v13 = vpop.xlane.xlu1 %900  ;;  %v902_v14 = vsel %vm255_vm4, %v892_v9, %v898_v12 }
 0x4cb   :  { %v903_v15 = vsel %vm255_vm4, %v895_v10, %v901_v13  ;;  %v904_v16 = vsub.f32 %v2896_v1, %v902_v14  ;;  %v1096_v10 = vld [vmem:[#allocation2 + $0x4] sm:$0x1] }
 0x4cc   :  { %v905_v17 = vsub.f32 %v2898_v4, %v903_v15 }
 0x4cd   :  { %v906_v18 = vmul.f32 1.442695, %v904_v16 }
 0x4ce   :  { %v908_v19 = vmul.f32 1.442695, %v905_v17 }
 0x4cf   :  { %2507 = vpow2.f32 %v906_v18 }
 0x4d0   :  { %2509 = vpow2.f32 %v908_v19 }
 0x4d9   :  { %v2508_v20 = vpop.eup %2507 }
 0x4da   :  { %v2510_v21 = vpop.eup %2509  ;;  %2263 = vmatmul.mubr.msk.f32.vlgmr.msra.gmra.mrb[8].mxu0 %vm92_vm1, %v2508_v20 }
 0x4db   :  { %2274 = vmatmul.mubr.msk.f32.vlgmr.msra.gmra.mrb[8].mxu1 %vm92_vm1, %v2510_v21  ;;  %2426 = vmatpush3.bf16.msra.mxu0 %v2814_v50 }
 0x4dc   :  { %2432 = vmatpush3.bf16.msra.mxu1 %v2820_v56  ;;  %2427 = vmatprep.subr.bf16.mxu0 %v2664_v3 }
 0x4dd   :  { %2433 = vmatprep.subr.bf16.mxu1 %v2664_v3  ;;  %2284 = vmatprep.mubr.msk.f32.mxu0 %vm2665_vm0, %v2666_v11 }
 0x4de   :  { %2295 = vmatprep.mubr.msk.f32.mxu1 %vm2665_vm0, %v2666_v11 }
 0x4df   :  { %2429 = vmatpush3.bf16.msra.mxu0 %v2818_v54 }
 0x4e0   :  { %2435 = vmatpush3.bf16.msra.mxu1 %v2826_v60  ;;  %2436 = vmatprep.subr.bf16.mxu0 %v2664_v3 }
 0x4e1   :  { %2442 = vmatprep.subr.bf16.mxu1 %v2664_v3 }
 0x5ad   :  { %v979_v22 = vpop.f32.mrb[8].mxu0 }
 0x5ae   :  { %2511 = vlog2.f32 %v979_v22  ;;  %v1052_v23 = vpop.f32.mrb[8].mxu1  ;;  %v2264_v24 = vpop.f32.mrb[9].mxu0 }
 0x5af   :  { %2513 = vlog2.f32 %v1052_v23  ;;  %v2275_v25 = vpop.f32.mrb[9].mxu1 }
 0x5b8   :  { %v2512_v26 = vpop.eup %2511 }
 0x5b9   :  { %v2514_v29 = vpop.eup %2513  ;;  %v1057_v33 = vmul.f32 0.6931472, %v2512_v26 }
 0x5ba   :  { %v1059_v35 = vmul.f32 0.6931472, %v2514_v29 }
 0x5bb   :  { %v1060_v36 = vadd.f32 %v1057_v33, %v902_v14  ;;  %v1097_v14 = vld [vmem:[#allocation2 + $0xc] sm:$0x1] }
 0x5bc   :  { %v1061_v38 = vadd.f32 %v1059_v35, %v903_v15 }
 0x5bd   :  { %v2928_v39 = vadd.f32 %v1060_v36, %v888_v37 }
 0x5be   :  { %v2930_v41 = vadd.f32 %v1061_v38, %v889_v40 }
 0x5bf   :  { %v1098_v42 = vsel %vm263_vm3, %v2928_v39, -inf  ;;  %v1104_v44 = vsel %vm270_vm2, %v2928_v39, -inf }
 0x5c0   :  { %v1101_v43 = vsel %vm263_vm3, %v2930_v41, -inf  ;;  %1099 = vmax.xlane.f32.xlu0 %v1098_v42  ;;  %v1107_v45 = vsel %vm270_vm2, %v2930_v41, -inf }
 0x5c1   :  { %1102 = vmax.xlane.f32.xlu1 %v1101_v43 }
 0x5c4   :  { %1105 = vmax.xlane.f32.xlu0 %v1104_v44 }
 0x5c5   :  { %1108 = vmax.xlane.f32.xlu1 %v1107_v45 }
 0x64d   :  { %v1100_v46 = vpop.xlane.xlu0 %1099 }
 0x64e   :  { %v1103_v47 = vpop.xlane.xlu1 %1102 }
 0x651   :  { %v1106_v48 = vpop.xlane.xlu0 %1105 }
 0x652   :  { %v1109_v49 = vpop.xlane.xlu1 %1108  ;;  %v1110_v51 = vsel %vm255_vm4, %v1100_v46, %v1106_v48 }
 0x653   :  { %v1111_v52 = vsel %vm255_vm4, %v1103_v47, %v1109_v49  ;;  %v1112_v53 = vsub.f32 %v2928_v39, %v1110_v51  ;;  %v1304_v49 = vld [vmem:[#allocation2 + $0x5] sm:$0x1] }
 0x654   :  { %v1113_v55 = vsub.f32 %v2930_v41, %v1111_v52 }
 0x655   :  { %v1114_v57 = vmul.f32 1.442695, %v1112_v53  ;;  %v1305_v53 = vld [vmem:[#allocation2 + $0xd] sm:$0x1] }
 0x656   :  { %v1116_v58 = vmul.f32 1.442695, %v1113_v55 }
 0x657   :  { %2515 = vpow2.f32 %v1114_v57 }
 0x658   :  { %2517 = vpow2.f32 %v1116_v58 }
 0x661   :  { %v2516_v59 = vpop.eup %2515 }
 0x662   :  { %v2518_v61 = vpop.eup %2517  ;;  %2285 = vmatmul.mubr.msk.f32.vlgmr.msra.gmra.mrb[10].mxu0 %vm92_vm1, %v2516_v59 }
 0x663   :  { %2296 = vmatmul.mubr.msk.f32.vlgmr.msra.gmra.mrb[10].mxu1 %vm92_vm1, %v2518_v61  ;;  %2438 = vmatpush3.bf16.msra.mxu0 %v2814_v50 }
 0x664   :  { %2444 = vmatpush3.bf16.msra.mxu1 %v2820_v56  ;;  %2439 = vmatprep.subr.bf16.mxu0 %v2664_v3 }
 0x665   :  { %2445 = vmatprep.subr.bf16.mxu1 %v2664_v3  ;;  %2306 = vmatprep.mubr.msk.f32.mxu0 %vm2665_vm0, %v2666_v11 }
 0x666   :  { %2317 = vmatprep.mubr.msk.f32.mxu1 %vm2665_vm0, %v2666_v11 }
 0x667   :  { %2441 = vmatpush3.bf16.msra.mxu0 %v2818_v54 }
 0x668   :  { %2447 = vmatpush3.bf16.msra.mxu1 %v2826_v60  ;;  %2448 = vmatprep.subr.bf16.mxu0 %v2664_v3 }
 0x669   :  { %2454 = vmatprep.subr.bf16.mxu1 %v2664_v3 }
 0x735   :  { %v1187_v62 = vpop.f32.mrb[10].mxu0 }
 0x736   :  { %2519 = vlog2.f32 %v1187_v62  ;;  %v1260_v63 = vpop.f32.mrb[10].mxu1  ;;  %v2286_v0 = vpop.f32.mrb[11].mxu0 }
 0x737   :  { %2521 = vlog2.f32 %v1260_v63  ;;  %v2297_v2 = vpop.f32.mrb[11].mxu1 }
 0x740   :  { %v2520_v5 = vpop.eup %2519 }
 0x741   :  { %v2522_v6 = vpop.eup %2521  ;;  %v1265_v7 = vmul.f32 0.6931472, %v2520_v5 }
 0x742   :  { %v1267_v8 = vmul.f32 0.6931472, %v2522_v6 }
 0x743   :  { %v1268_v9 = vadd.f32 %v1265_v7, %v1110_v51 }
 0x744   :  { %v1269_v12 = vadd.f32 %v1267_v8, %v1111_v52 }
 0x745   :  { %v2960_v13 = vadd.f32 %v1268_v9, %v1096_v10 }
 0x746   :  { %v2962_v15 = vadd.f32 %v1269_v12, %v1097_v14 }
 0x747   :  { %v1306_v16 = vsel %vm263_vm3, %v2960_v13, -inf  ;;  %v1312_v18 = vsel %vm270_vm2, %v2960_v13, -inf }
 0x748   :  { %v1309_v17 = vsel %vm263_vm3, %v2962_v15, -inf  ;;  %1307 = vmax.xlane.f32.xlu0 %v1306_v16  ;;  %v1315_v19 = vsel %vm270_vm2, %v2962_v15, -inf  ;;  %v2667_v16 = vmov 0  }
 0x749   :  { %1310 = vmax.xlane.f32.xlu1 %v1309_v17  ;;  %2485 = vset.pattern.permute.xlu0 %v2667_v16 }
 0x74a   :  { %2486 = vset.pattern.permute.xlu1 %v2667_v16 }
 0x74c   :  { %1313 = vmax.xlane.f32.xlu0 %v1312_v18 }
 0x74d   :  { %1316 = vmax.xlane.f32.xlu1 %v1315_v19 }
 0x7d5   :  { %v1308_v20 = vpop.xlane.xlu0 %1307 }
 0x7d6   :  { %v1311_v21 = vpop.xlane.xlu1 %1310 }
 0x7d9   :  { %v1314_v22 = vpop.xlane.xlu0 %1313 }
 0x7da   :  { %v1317_v23 = vpop.xlane.xlu1 %1316  ;;  %v1318_v24 = vsel %vm255_vm4, %v1308_v20, %v1314_v22  ;;  %v1512_v22 = vld [vmem:[#allocation2 + $0x6] sm:$0x1] }
 0x7db   :  { %v1319_v25 = vsel %vm255_vm4, %v1311_v21, %v1317_v23  ;;  %v1320_v26 = vsub.f32 %v2960_v13, %v1318_v24 }
 0x7dc   :  { %v1321_v29 = vsub.f32 %v2962_v15, %v1319_v25 }
 0x7dd   :  { %v1322_v33 = vmul.f32 1.442695, %v1320_v26 }
 0x7de   :  { %v1324_v35 = vmul.f32 1.442695, %v1321_v29 }
 0x7df   :  { %2523 = vpow2.f32 %v1322_v33 }
 0x7e0   :  { %2525 = vpow2.f32 %v1324_v35  ;;  %v252_v35 = vld [vmem:[%s3179_s6 + $0x1] sm:$0x1] }
 0x7e9   :  { %v2524_v36 = vpop.eup %2523 }
 0x7ea   :  { %v2526_v37 = vpop.eup %2525  ;;  %2307 = vmatmul.mubr.msk.f32.vlgmr.msra.gmra.mrb[12].mxu0 %vm92_vm1, %v2524_v36  ;;  %v2042_v36 = vadd.s32 4294967295, %v252_v35 }
 0x7eb   :  { %2318 = vmatmul.mubr.msk.f32.vlgmr.msra.gmra.mrb[12].mxu1 %vm92_vm1, %v2526_v37  ;;  %2450 = vmatpush3.bf16.msra.mxu0 %v2814_v50  ;;  %v251_v37 = vld [vmem:[%s3179_s6] sm:$0x1] }
 0x7ec   :  { %2456 = vmatpush3.bf16.msra.mxu1 %v2820_v56  ;;  %2451 = vmatprep.subr.bf16.mxu0 %v2664_v3  ;;  %vm2044_vm5 = vcmp.eq.s32.totalorder %v2042_v36, 0  ;;  %vm2048_vm8 = vcmp.eq.s32.totalorder %v2042_v36, 1  ;;  %vm2060_vm9 = vcmp.eq.s32.totalorder %v2042_v36, 4  ;;  %vm2064_vm11 = vcmp.eq.s32.totalorder %v2042_v36, 5 }
 0x7ed   :  { %2457 = vmatprep.subr.bf16.mxu1 %v2664_v3  ;;  %2328 = vmatprep.mubr.msk.f32.mxu0 %vm2665_vm0, %v2666_v11  ;;  %vm2052_vm12 = vcmp.eq.s32.totalorder %v2042_v36, 2  ;;  %vm2068_vm13 = vcmp.eq.s32.totalorder %v2042_v36, 6  ;;  %vm2056_vm15 = vcmp.eq.s32.totalorder %v2042_v36, 3 }
 0x7ee   :  { %2339 = vmatprep.mubr.msk.f32.mxu1 %vm2665_vm0, %v2666_v11 }
 0x7ef   :  { %2453 = vmatpush3.bf16.msra.mxu0 %v2818_v54 }
 0x7f0   :  { %2459 = vmatpush3.bf16.msra.mxu1 %v2826_v60  ;;  %2460 = vmatprep.subr.bf16.mxu0 %v2664_v3 }
 0x7f1   :  { %2466 = vmatprep.subr.bf16.mxu1 %v2664_v3 }
 0x8bd   :  { %v1395_v38 = vpop.f32.mrb[12].mxu0 }
 0x8be   :  { %2527 = vlog2.f32 %v1395_v38  ;;  %v1468_v40 = vpop.f32.mrb[12].mxu1  ;;  %v2308_v42 = vpop.f32.mrb[13].mxu0  ;;  %v2041_v38 = vadd.s32 4294967295, %v251_v37 }
 0x8bf   :  { %2529 = vlog2.f32 %v1468_v40  ;;  %v2319_v43 = vpop.f32.mrb[13].mxu1  ;;  %v453_v40 = vsel %vm2044_vm5, 1, %v2667_v16 }
 0x8c0   :  { %vm2047_vm6 = vcmp.eq.s32.totalorder %v2041_v38, 1  ;;  %vm2043_vm7 = vcmp.eq.s32.totalorder %v2041_v38, 0  ;;  %vm2051_vm10 = vcmp.eq.s32.totalorder %v2041_v38, 2  ;;  %vm2055_vm14 = vcmp.eq.s32.totalorder %v2041_v38, 3 }
 0x8c1   :  { %v660_v42 = vsel %vm2047_vm6, 1, %v2667_v16  ;;  %v452_v43 = vsel %vm2043_vm7, 1, %v2667_v16  ;;  %vm2063_vm5 = vcmp.eq.s32.totalorder %v2041_v38, 5  ;;  %vm2067_vm6 = vcmp.eq.s32.totalorder %v2041_v38, 6 }
 0x8c2   :  { %vm2071_vm7 = vcmp.eq.s32.totalorder %v2041_v38, 7 }
 0x8c8   :  { %v2528_v44 = vpop.eup %2527 }
 0x8c9   :  { %v2530_v45 = vpop.eup %2529  ;;  %v1473_v46 = vmul.f32 0.6931472, %v2528_v44  ;;  %v661_v44 = vsel %vm2048_vm8, 1, %v2667_v16  ;;  %vm2072_vm8 = vcmp.eq.s32.totalorder %v2042_v36, 7 }
 0x8ca   :  { %v1475_v47 = vmul.f32 0.6931472, %v2530_v45  ;;  %v1285_v45 = vsel %vm2060_vm9, 1, %v2667_v16 }
 0x8cb   :  { %v1476_v48 = vadd.f32 %v1473_v46, %v1318_v24  ;;  %v868_v46 = vsel %vm2051_vm10, 1, %v2667_v16 }
 0x8cc   :  { %v1477_v51 = vadd.f32 %v1475_v47, %v1319_v25  ;;  %v1493_v47 = vsel %vm2064_vm11, 1, %v2667_v16 }
 0x8cd   :  { %v2992_v52 = vadd.f32 %v1476_v48, %v1304_v49  ;;  %v869_v48 = vsel %vm2052_vm12, 1, %v2667_v16  ;;  %v1701_v49 = vsel %vm2068_vm13, 1, %v2667_v16 }
 0x8ce   :  { %v2994_v55 = vadd.f32 %v1477_v51, %v1305_v53  ;;  %v1076_v51 = vsel %vm2055_vm14, 1, %v2667_v16  ;;  %v1077_v53 = vsel %vm2056_vm15, 1, %v2667_v16 }
 0x8cf   :  { %v1514_v57 = vsel %vm263_vm3, %v2992_v52, -inf  ;;  %v1520_v59 = vsel %vm270_vm2, %v2992_v52, -inf }
 0x8d0   :  { %v1517_v58 = vsel %vm263_vm3, %v2994_v55, -inf  ;;  %1515 = vmax.xlane.f32.xlu0 %v1514_v57  ;;  %v1523_v61 = vsel %vm270_vm2, %v2994_v55, -inf }
 0x8d1   :  { %1518 = vmax.xlane.f32.xlu1 %v1517_v58  ;;  %v1492_v58 = vsel %vm2063_vm5, 1, %v2667_v16 }
 0x8d4   :  { %1521 = vmax.xlane.f32.xlu0 %v1520_v59  ;;  %v1700_v59 = vsel %vm2067_vm6, 1, %v2667_v16 }
 0x8d5   :  { %1524 = vmax.xlane.f32.xlu1 %v1523_v61  ;;  %v1908_v61 = vsel %vm2071_vm7, 1, %v2667_v16 }
 0x95d   :  { %v1516_v62 = vpop.xlane.xlu0 %1515 }
 0x95e   :  { %v1519_v63 = vpop.xlane.xlu1 %1518 }
 0x961   :  { %v1522_v0 = vpop.xlane.xlu0 %1521 }
 0x962   :  { %v1525_v2 = vpop.xlane.xlu1 %1524  ;;  %v1526_v5 = vsel %vm255_vm4, %v1516_v62, %v1522_v0  ;;  %v1909_v62 = vsel %vm2072_vm8, 1, %v2667_v16 }
 0x963   :  { %v1527_v6 = vsel %vm255_vm4, %v1519_v63, %v1525_v2  ;;  %v1528_v7 = vsub.f32 %v2992_v52, %v1526_v5 }
 0x964   :  { %v1529_v8 = vsub.f32 %v2994_v55, %v1527_v6 }
 0x965   :  { %v1530_v9 = vmul.f32 1.442695, %v1528_v7 }
 0x966   :  { %v1532_v10 = vmul.f32 1.442695, %v1529_v8 }
 0x967   :  { %2531 = vpow2.f32 %v1530_v9 }
 0x968   :  { %2533 = vpow2.f32 %v1532_v10 }
 0x971   :  { %v2532_v12 = vpop.eup %2531 }
 0x972   :  { %v2534_v14 = vpop.eup %2533  ;;  %2329 = vmatmul.mubr.msk.f32.vlgmr.msra.gmra.mrb[14].mxu0 %vm92_vm1, %v2532_v12 }
 0x973   :  { %2340 = vmatmul.mubr.msk.f32.vlgmr.msra.gmra.mrb[14].mxu1 %vm92_vm1, %v2534_v14  ;;  %2462 = vmatpush3.bf16.msra.mxu0 %v2814_v50 }
 0x974   :  { %2468 = vmatpush3.bf16.msra.mxu1 %v2820_v56  ;;  %2463 = vmatprep.subr.bf16.mxu0 %v2664_v3 }
 0x975   :  { %2469 = vmatprep.subr.bf16.mxu1 %v2664_v3  ;;  %2361 = vmatprep.mubr.msk.f32.mxu1 %vm2665_vm0, %v2666_v11 }
 0x976   :  { %2350 = vmatprep.mubr.msk.f32.mxu0 %vm2665_vm0, %v2666_v11  ;;  %vm2059_vm0 = vcmp.eq.s32.totalorder %v2041_v38, 4 }
 0x977   :  { %2465 = vmatpush3.bf16.msra.mxu0 %v2818_v54  ;;  %v1284_v57 = vsel %vm2059_vm0, 1, %v2667_v16 }
 0x978   :  { %2471 = vmatpush3.bf16.msra.mxu1 %v2826_v60  ;;  %v1513_v60 = vld [vmem:[#allocation2 + $0xe] sm:$0x1] }
 0xa45   :  { %v1603_v50 = vpop.f32.mrb[14].mxu0 }
 0xa46   :  { %2535 = vlog2.f32 %v1603_v50  ;;  %v1676_v56 = vpop.f32.mrb[14].mxu1  ;;  %v2330_v17 = vpop.f32.mrb[15].mxu0 }
 0xa47   :  { %2537 = vlog2.f32 %v1676_v56  ;;  %v2341_v3 = vpop.f32.mrb[15].mxu1 }
 0xa50   :  { %v2536_v18 = vpop.eup %2535 }
 0xa51   :  { %v2538_v19 = vpop.eup %2537  ;;  %v1681_v20 = vmul.f32 0.6931472, %v2536_v18 }
 0xa52   :  { %v1683_v21 = vmul.f32 0.6931472, %v2538_v19 }
 0xa53   :  { %v1684_v11 = vadd.f32 %v1681_v20, %v1526_v5 }
 0xa54   :  { %v1685_v54 = vadd.f32 %v1683_v21, %v1527_v6 }
 0xa55   :  { %v3024_v23 = vadd.f32 %v1684_v11, %v1512_v22  ;;  %v458_v11 = vshrl.u32 %v253_v28, 7 }
 0xa56   :  { %v3026_v24 = vadd.f32 %v1685_v54, %v1513_v60 }
 0xa57   :  { %v1722_v25 = vsel %vm263_vm3, %v3024_v23, -inf  ;;  %v1728_v29 = vsel %vm270_vm2, %v3024_v23, -inf  ;;  %v3073_v60 = vsub.s32 0, %v458_v11 }
 0xa58   :  { %v1725_v26 = vsel %vm263_vm3, %v3026_v24, -inf  ;;  %1723 = vmax.xlane.f32.xlu0 %v1722_v25  ;;  %v1731_v33 = vsel %vm270_vm2, %v3026_v24, -inf }
 0xa59   :  { %1726 = vmax.xlane.f32.xlu1 %v1725_v26 }
 0xa5c   :  { %1729 = vmax.xlane.f32.xlu0 %v1728_v29 }
 0xa5d   :  { %1732 = vmax.xlane.f32.xlu1 %v1731_v33 }
 0xa6e   :  { %462 = vperm.xlu1 %2486, %v453_v40  }
 0xa72   :  { %663 = vperm.xlu1 %2486, %v660_v42   ;;  %455 = vperm.xlu0 %2485, %v452_v43   ;;  %v260_v43 = vld [vmem:[#allocation4 + $0x1] sm:$0x1] }
 0xa76   :  { %670 = vperm.xlu1 %2486, %v661_v44   ;;  %1294 = vperm.xlu0 %2485, %v1285_v45  }
 0xa7a   :  { %871 = vperm.xlu1 %2486, %v868_v46   ;;  %1502 = vperm.xlu0 %2485, %v1493_v47   ;;  %v259_v46 = vld [vmem:[#allocation4] sm:$0x1] }
 0xa7e   :  { %878 = vperm.xlu1 %2486, %v869_v48   ;;  %1710 = vperm.xlu0 %2485, %v1701_v49  }
 0xa82   :  { %1079 = vperm.xlu1 %2486, %v1076_v51   ;;  %1918 = vperm.xlu0 %2485, %v1909_v62  }
 0xa86   :  { %1086 = vperm.xlu1 %2486, %v1077_v53  }
 0xa8a   :  { %1287 = vperm.xlu1 %2486, %v1284_v57  }
 0xa8e   :  { %1495 = vperm.xlu1 %2486, %v1492_v58  }
 0xa92   :  { %1703 = vperm.xlu1 %2486, %v1700_v59  }
 0xa96   :  { %1911 = vperm.xlu1 %2486, %v1908_v61  }
 0xae5   :  { %v1724_v63 = vpop.xlane.xlu0 %1723 }
 0xae6   :  { %v1727_v0 = vpop.xlane.xlu1 %1726 }
 0xae9   :  { %v1730_v2 = vpop.xlane.xlu0 %1729 }
 0xaea   :  { %v1733_v5 = vpop.xlane.xlu1 %1732  ;;  %v3060_v6 = vsel %vm255_vm4, %v1724_v63, %v1730_v2 }
 0xaeb   :  { %v3064_v7 = vsel %vm255_vm4, %v1727_v0, %v1733_v5  ;;  %v1736_v8 = vsub.f32 %v3024_v23, %v3060_v6 }
 0xaec   :  { %v1737_v9 = vsub.f32 %v3026_v24, %v3064_v7 }
 0xaed   :  { %v1738_v10 = vmul.f32 1.442695, %v1736_v8 }
 0xaee   :  { %v1740_v12 = vmul.f32 1.442695, %v1737_v9  ;;  %v463_v50 = vpop.permute.xlu1 %462 }
 0xaef   :  { %2539 = vpow2.f32 %v1738_v10  ;;  %v467_v25 = vrot.slane %v463_v50, %v3073_v60 }
 0xaf0   :  { %2541 = vpow2.f32 %v1740_v12 }
 0xaf1   :  { %v456_v21 = vpop.permute.xlu0 %455 }
 0xaf2   :  { %v664_v56 = vpop.permute.xlu1 %663  ;;  %v460_v36 = vrot.slane %v456_v21, %v3073_v60  ;;  %v1720_v21 = vld [vmem:[#allocation2 + $0x7] sm:$0x1] }
 0xaf3   :  { %v668_v44 = vrot.slane %v664_v56, %v3073_v60 }
 0xaf4   :  { %vm3082_vm9 = vcmp.eq.s32.totalorder %v460_v36, 1 }
 0xaf5   :  { %v1295_v22 = vpop.permute.xlu0 %1294  ;;  %vm676_vm12 = vcmp.eq.s32.totalorder %v668_v44, 1  ;;  %v470_v61 = vsel %vm3082_vm9, %v2794_v31, %v259_v46 }
 0xaf6   :  { %v671_v17 = vpop.permute.xlu1 %670  ;;  %v1299_v45 = vrot.slane %v1295_v22, %v3073_v60  ;;  %v678_v9 = vsel %vm676_vm12, %v2864_v27, %v470_v61 }
 0xaf7   :  { %v675_v29 = vrot.slane %v671_v17, %v3073_v60 }
 0xaf8   :  { %vm3095_vm13 = vcmp.eq.s32.totalorder %v1299_v45, 1 }
 0xaf9   :  { %v2540_v14 = vpop.eup %2539  ;;  %v1503_v26 = vpop.permute.xlu0 %1502  ;;  %vm677_vm4 = vcmp.eq.s32.totalorder %v675_v29, 1 }
 0xafa   :  { %v2542_v16 = vpop.eup %2541  ;;  %2351 = vmatmul.mubr.msk.f32.vlgmr.msra.gmra.mrb[16].mxu0 %vm92_vm1, %v2540_v14  ;;  %v872_v3 = vpop.permute.xlu1 %871  ;;  %v1507_v59 = vrot.slane %v1503_v26, %v3073_v60 }
 0xafb   :  { %2362 = vmatmul.mubr.msk.f32.vlgmr.msra.gmra.mrb[16].mxu1 %vm92_vm1, %v2542_v16  ;;  %vm469_vm1 = vcmp.eq.s32.totalorder %v467_v25, 1  ;;  %v876_v48 = vrot.slane %v872_v3, %v3073_v60 }
 0xafc   :  { %v471_v49 = vsel %vm469_vm1, %v2796_v32, %v260_v43  ;;  %vm1509_vm0 = vcmp.eq.s32.totalorder %v1507_v59, 1  ;;  %vm1928_vm1 = vcmask 253952  }
 0xafd   :  { %v1711_v51 = vpop.permute.xlu0 %1710  ;;  %v679_v57 = vsel %vm677_vm4, %v2866_v30, %v471_v49  ;;  %vm3100_vm14 = vcmp.eq.s32.totalorder %v876_v48, 1 }
 0xafe   :  { %v879_v18 = vpop.permute.xlu1 %878  ;;  %v1715_v2 = vrot.slane %v1711_v51, %v3073_v60  ;;  %v886_v14 = vsel %vm3100_vm14, %v2896_v1, %v678_v9 }
 0xaff   :  { %v883_v37 = vrot.slane %v879_v18, %v3073_v60 }
 0xb00   :  { %vm3119_vm6 = vcmp.eq.s32.totalorder %v1715_v2, 1 }
 0xb01   :  { %vm885_vm10 = vcmp.eq.s32.totalorder %v883_v37, 1  ;;  %v1919_v10 = vpop.permute.xlu0 %1918 }
 0xb02   :  { %v1080_v19 = vpop.permute.xlu1 %1079  ;;  %v887_v62 = vsel %vm885_vm10, %v2898_v4, %v679_v57  ;;  %vm2009_vm10 = vcmask (!%p2075_p2), 8192  }
 0xb03   :  { %v1084_v58 = vrot.slane %v1080_v19, %v3073_v60 }
 0xb05   :  { %vm1092_vm15 = vcmp.eq.s32.totalorder %v1084_v58, 1 }
 0xb06   :  { %v1087_v20 = vpop.permute.xlu1 %1086  ;;  %v1094_v3 = vsel %vm1092_vm15, %v2928_v39, %v886_v14 }
 0xb07   :  { %v1091_v28 = vrot.slane %v1087_v20, %v3073_v60 }
 0xb09   :  { %vm1093_vm11 = vcmp.eq.s32.totalorder %v1091_v28, 1 }
 0xb0a   :  { %v1288_v54 = vpop.permute.xlu1 %1287  ;;  %v1095_v30 = vsel %vm1093_vm11, %v2930_v41, %v887_v62 }
 0xb0b   :  { %v1292_v32 = vrot.slane %v1288_v54, %v3073_v60  ;;  %v1303_v41 = vsel %vm3095_vm13, %v2962_v15, %v1095_v30  ;;  %v1923_v15 = vrot.slane %v1919_v10, %v3073_v60  ;;  %v1721_v54 = vld [vmem:[#allocation2 + $0xf] sm:$0x1] }
 0xb0c   :  { %v1511_v19 = vsel %vm1509_vm0, %v2994_v55, %v1303_v41 }
 0xb0d   :  { %vm3115_vm5 = vcmp.eq.s32.totalorder %v1292_v32, 1  ;;  %v1719_v55 = vsel %vm3119_vm6, %v3026_v24, %v1511_v19  ;;  %vm1925_vm9 = vcmp.eq.s32.totalorder %v1923_v15, 1 }
 0xb0e   :  { %v1496_v33 = vpop.permute.xlu1 %1495  ;;  %v1302_v20 = vsel %vm3115_vm5, %v2960_v13, %v1094_v3 }
 0xb0f   :  { %v1500_v5 = vrot.slane %v1496_v33, %v3073_v60 }
 0xb11   :  { %vm1508_vm7 = vcmp.eq.s32.totalorder %v1500_v5, 1 }
 0xb12   :  { %v1704_v53 = vpop.permute.xlu1 %1703  ;;  %v1510_v39 = vsel %vm1508_vm7, %v2992_v52, %v1302_v20  ;;  %v1938_v52 = vld [vmem:[%s3178_s5] sm:$0x1] (!%p2075_p2) }
 0xb13   :  { %v1708_v31 = vrot.slane %v1704_v53, %v3073_v60 }
 0xb15   :  { %vm3125_vm8 = vcmp.eq.s32.totalorder %v1708_v31, 1 }
 0xb16   :  { %v1912_v8 = vpop.permute.xlu1 %1911  ;;  %v1718_v25 = vsel %vm3125_vm8, %v3024_v23, %v1510_v39  ;;  %v1939_v23 = vld [vmem:[%s3178_s5 + $0x1] sm:$0x1] (!%p2075_p2)  ;;  %s2668_s5 = smov (!%p2075_p2), 112  }
 0xb17   :  { %v1916_v27 = vrot.slane %v1912_v8, %v3073_v60 }
 0xb19   :  { %vm1924_vm4 = vcmp.eq.s32.totalorder %v1916_v27, 1 }
 0xbcd   :  { %v1811_v35 = vpop.f32.mrb[16].mxu0 }
 0xbce   :  { %2543 = vlog2.f32 %v1811_v35  ;;  %v1884_v38 = vpop.f32.mrb[16].mxu1  ;;  %v2352_v40 = vpop.f32.mrb[17].mxu0 }
 0xbcf   :  { %2545 = vlog2.f32 %v1884_v38  ;;  %v2363_v42 = vpop.f32.mrb[17].mxu1 }
 0xbd8   :  { %v2544_v4 = vpop.eup %2543 }
 0xbd9   :  { %v2546_v12 = vpop.eup %2545  ;;  %v1889_v50 = vmul.f32 0.6931472, %v2544_v4 }
 0xbda   :  { %v1891_v17 = vmul.f32 0.6931472, %v2546_v12 }
 0xbdb   :  { %v1892_v18 = vadd.f32 %v1889_v50, %v3060_v6  ;;  %1937 = sbr.rel (%p2075_p2) target bundleno = 3481 (0xd99), region = 45 }
 0xbdc   :  { %v1893_v11 = vadd.f32 %v1891_v17, %v3064_v7 }
 0xbdd   :  { %v1894_v22 = vadd.f32 %v1892_v18, %v1720_v21 }
 0xbde   :  { %v1895_v6 = vadd.f32 %v1893_v11, %v1721_v54 }
 0xbdf   :  { %v1926_v13 = vsel %vm1924_vm4, %v1894_v22, %v1718_v25  ;;  %1929 = vst.msk [vmem:[#allocation3] sm:$0x1] %vm1928_vm1, %v1894_v22 }
 0xbe0   :  { %1931 = vst.msk [vmem:[#allocation4] sm:$0x1] %vm1928_vm1, %v1926_v13  ;;  %v1927_v26 = vsel %vm1925_vm9, %v1895_v6, %v1719_v55  ;;  %1930 = vst.msk [vmem:[#allocation3 + $0x1] sm:$0x1] %vm1928_vm1, %v1895_v6  ;;  %v1940_v7 = vadd.f32 (!%p2075_p2), %v1938_v52, %v1926_v13 }
 0xbe1   :  { %1932 = vst.msk [vmem:[#allocation4 + $0x1] sm:$0x1] %vm1928_vm1, %v1927_v26  ;;  %v1941_v24 = vadd.f32 (!%p2075_p2), %v1939_v23, %v1927_v26 }
 0xbe2   :  { %v1966_v29 = vsel %vm270_vm2, %v1940_v7, -inf  ;;  %v1942_v33 = vsel %vm263_vm3, %v1940_v7, -inf }
 0xbe3   :  { %1967 = vmax.xlane.f32.xlu0 %v1966_v29  ;;  %1943 = vmax.xlane.f32.xlu1 %v1942_v33  ;;  %v1969_v35 = vsel %vm270_vm2, %v1941_v24, -inf  ;;  %v1945_v36 = vsel %vm263_vm3, %v1941_v24, -inf  ;;  %vm2006_vm2 = vcmp.eq.s32.totalorder %v2801_v34, 0 }
 0xbe7   :  { %1970 = vmax.xlane.f32.xlu0 %v1969_v35  ;;  %1946 = vmax.xlane.f32.xlu1 %v1945_v36 }
 0xc70   :  { %v1968_v37 = vpop.xlane.xlu0 %1967  ;;  %v1944_v46 = vpop.xlane.xlu1 %1943 }
 0xc71   :  { %v1972_v38 = vsub.f32 %v1940_v7, %v1968_v37  ;;  %v1948_v57 = vsub.f32 %v1940_v7, %v1944_v46 }
 0xc73   :  { %v1974_v40 = vmul.f32 1.442695, %v1972_v38  ;;  %v1950_v58 = vmul.f32 1.442695, %v1948_v57 }
 0xc74   :  { %v1971_v28 = vpop.xlane.xlu0 %1970  ;;  %v1947_v49 = vpop.xlane.xlu1 %1946 }
 0xc75   :  { %2547 = vpow2.f32 %v1974_v40  ;;  %v1973_v42 = vsub.f32 %v1941_v24, %v1971_v28  ;;  %v1949_v51 = vsub.f32 %v1941_v24, %v1947_v49 }
 0xc77   :  { %v1976_v43 = vmul.f32 1.442695, %v1973_v42  ;;  %v1952_v53 = vmul.f32 1.442695, %v1949_v51 }
 0xc79   :  { %2549 = vpow2.f32 %v1976_v43 }
 0xc7a   :  { %2551 = vpow2.f32 %v1952_v53 }
 0xc7b   :  { %2553 = vpow2.f32 %v1950_v58 }
 0xc7f   :  { %v2548_v44 = vpop.eup %2547 }
 0xc80   :  { %v1983_v45 = vrot.slane %v2548_v44, %v3073_v60 }
 0xc82   :  { %1988 = vrot.lane.b32.xlu0 %v1983_v45, %s2668_s5 }
 0xc83   :  { %v2550_v47 = vpop.eup %2549 }
 0xc84   :  { %v1987_v48 = vrot.slane %v2550_v47, %v3073_v60  ;;  %v2552_v59 = vpop.eup %2551 }
 0xc85   :  { %v1957_v61 = vsel %vm263_vm3, %v2552_v59, 0.0  ;;  %v2554_v62 = vpop.eup %2553 }
 0xc86   :  { %1990 = vrot.lane.b32.xlu1 %v1987_v48, %s2668_s5  ;;  %v1954_v63 = vsel %vm263_vm3, %v2554_v62, 0.0 }
 0xca1   :  { %1958 = vadd.xlane.f32.xlu0 %v1957_v61 }
 0xcaa   :  { %1955 = vadd.xlane.f32.xlu1 %v1954_v63 }
 0xcf4   :  { %v1989_v32 = vpop.permute.xlu0 %1988 }
 0xcf5   :  { %v1994_v0 = vsel %vm263_vm3, %v1989_v32, 0.0 }
 0xcf6   :  { %1995 = vadd.xlane.f32.xlu0 %v1994_v0 }
 0xcf8   :  { %v1991_v60 = vpop.permute.xlu1 %1990 }
 0xcf9   :  { %v1997_v30 = vsel %vm263_vm3, %v1991_v60, 0.0 }
 0xcfa   :  { %1998 = vadd.xlane.f32.xlu1 %v1997_v30 }
 0xd2e   :  { %v1959_v5 = vpop.xlane.xlu0 %1958 }
 0xd37   :  { %v1956_v2 = vpop.xlane.xlu1 %1955 }
 0xd38   :  { %2555 = vlog2.f32 %v1956_v2 }
 0xd39   :  { %2557 = vlog2.f32 %v1959_v5 }
 0xd42   :  { %v2556_v4 = vpop.eup %2555 }
 0xd43   :  { %v2558_v9 = vpop.eup %2557  ;;  %v1961_v10 = vmul.f32 0.6931472, %v2556_v4 }
 0xd44   :  { %v1963_v41 = vmul.f32 0.6931472, %v2558_v9 }
 0xd45   :  { %v1964_v16 = vadd.f32 %v1961_v10, %v1944_v46 }
 0xd46   :  { %v1965_v3 = vadd.f32 %v1963_v41, %v1947_v49 }
 0xd83   :  { %v1996_v31 = vpop.xlane.xlu0 %1995 }
 0xd84   :  { %2559 = vlog2.f32 %v1996_v31 }
 0xd87   :  { %v1999_v8 = vpop.xlane.xlu1 %1998 }
 0xd88   :  { %2561 = vlog2.f32 %v1999_v8 }
 0xd8e   :  { %v2560_v12 = vpop.eup %2559 }
 0xd8f   :  { %v2001_v14 = vmul.f32 0.6931472, %v2560_v12 }
 0xd91   :  { %v2004_v50 = vadd.f32 %v2001_v14, %v1968_v37 }
 0xd92   :  { %v2562_v56 = vpop.eup %2561 }
 0xd93   :  { %v2007_v27 = vsel %vm2006_vm2, %v1964_v16, %v2004_v50  ;;  %v2003_v17 = vmul.f32 0.6931472, %v2562_v56 }
 0xd94   :  { %2010 = vst.msk [vmem:[#allocation13] sm:$0x1] %vm2009_vm10, %v2007_v27 }
 0xd95   :  { %v2005_v1 = vadd.f32 %v2003_v17, %v1971_v28 }
 0xd97   :  { %v2008_v15 = vsel %vm2006_vm2, %v1965_v3, %v2005_v1 }
 0xd98   :  { %2011 = vst.msk [vmem:[#allocation13 + $0x1] sm:$0x1] %vm2009_vm10, %v2008_v15 }
 0xd99 PF:  { %s2669_s26 = smov [#allocation13]  }
 0xd9a   :  { %s2017_s9 = sshll.u32 %s2669_s26, 4  ;;  %s2018_s9 = int_to_ptr.vmem [resolvable:$true] %s2017_s9 }
 0xd9b   :  { %s2631_s10 = scalar_lea.vmem %s2018_s9, 32  ;;  %p2636_p4 = scmp.lt.s32.totalorder %s2018_s9, %s2018_s9 }
 0xd9c   :  { %p2632_p3 = scmp.ne.s32.totalorder %s2018_s9, %s2631_s10  ;;  %p2637_p5 = scmp.lt.s32.totalorder %s2631_s10, %s2631_s10 }
 0xd9e   :  { %p2638_p6 = por %p2637_p5, %p2636_p4 }
 0xda0   :  { %p2639_p7 = pnand %p2638_p6, %p2632_p3 }
 0xda2   :  { %2642 = shalt.err (!%p2639_p7)
}
 0xda3   :  { %s2643_s11 = scalar_lea.hbm %s3180_s7, 32 }
 0xda4   :  { %p2644_p8 = scmp.ne.s32.totalorder %s3180_s7, %s2643_s11  ;;  %p2647_p9 = scmp.lt.u32.totalorder %s2643_s11, %s3180_s7 }
 0xda6   :  { %p2649_p10 = pnand %p2647_p9, %p2644_p8 }
 0xda8   :  { %2652 = shalt.err (!%p2649_p10)
}
 0xda9   :  { %s2670_s17 = smov 16   ;;  %s2671_s18 = smov 1  }
 0xdaa   :  { %2023 = dma.vmem_to_hbm [thread:$0]  %s2018_s9, 32, %s3180_s7, [#allocation9], %s2670_s17, %s2670_s17, %s2671_s18  }
 0xdab   :  { %2657 = dma.done.wait [#allocation9], 32  }
 0xdac   :  { %2658 = vsyncadd [#allocation9], 4294967264 }
 0xdad   :  { %2027 = vsyncpa [#allocation8], 1 }
 0xdae   :  { %2028 = vsyncpa [#allocation11], 1 }
 0xdaf   :  { %2029 = vsyncpa [#allocation9], 1 }

</bundles_post_ra>
